<compile_context>
chip_gen: v5e
topology: v5e:2x2
jax: 0.10.0
libtpu: 0.0.40
codegen_flags: <defaults>
</compile_context>

<pallas_src>
import numpy as np

import jax
import jax.numpy as jnp
from jax import lax
from jax.experimental import pallas as pl
from jax.experimental.pallas import tpu as pltpu


def _causal_out_len(L, K, s):
    """Output length of CausalConv1d (symmetric pad K-1, then chop last_n)."""
    pad = K - 1
    L_full = (L + 2 * pad - K) // s + 1
    last_n = (2 * pad - K) // s + 1
    return L_full - max(last_n, 0)


def _align8(n):
    return ((n + 7) // 8) * 8


def residual_temporal_block_forward(x_btc, params, *, kernel_size=(5, 3),
                                    stride=(2, 2), n_groups=8, eps=1e-5,
                                    num_steps=None):
    """Fused forward: (CausalConv1d -> GroupNorm -> Mish) x 2 in one pallas_call.

    x_btc: (B, T, C_in) -- same layout as the PyTorch module's input/output.
    """
    B, T, C_in = x_btc.shape
    K0, K1 = kernel_size
    s0, s1 = stride
    w0 = params["block0"]["w"]            # (C_out, C_in, K0)
    w1 = params["block1"]["w"]            # (C_out, C_out, K1)
    C_out = w0.shape[0]
    assert C_out % n_groups == 0
    cpg = C_out // n_groups

    pad0, pad1 = K0 - 1, K1 - 1
    L0 = _causal_out_len(T, K0, s0)       # block0 output length
    L1 = _causal_out_len(L0, K1, s1)      # block1 output length (final)

    # ---- grid choice: 2-way parallel (one step per v7x TensorCore) if possible.
    if num_steps is None:
        num_steps = 2 if (B % 2 == 0 and B >= 2) else 1
    if B % num_steps != 0:
        num_steps = 1
    Bt = B // num_steps
    # block row counts must be sublane-divisible (or the full array)
    if num_steps > 1 and ((Bt * T) % 8 != 0 or (Bt * L1) % 8 != 0):
        num_steps, Bt = 1, B

    A0 = _align8(pad0)                    # aligned left-pad region (>= pad0)
    A1 = _align8(pad1)
    P0 = A0 + T                           # per-sample rows in xpad scratch
    P1 = A1 + L0
    off0 = A0 - pad0                      # shift of tap start due to alignment
    off1 = A1 - pad1
    denom0 = float(L0 * cpg)
    denom1 = float(L1 * cpg)

    # Host-side im2col weight layout: W2[k*C + i, o] = w[o, i, k]  -> (K*C, C_out)
    w0_2d = jnp.transpose(w0, (2, 1, 0)).reshape(K0 * C_in, C_out)
    w1_2d = jnp.transpose(w1, (2, 1, 0)).reshape(K1 * C_out, C_out)
    # bias / gamma / beta bundled per block -> (3, C_out)
    sc0 = jnp.stack([params["block0"]["b"], params["block0"]["gamma"],
                     params["block0"]["beta"]], axis=0)
    sc1 = jnp.stack([params["block1"]["b"], params["block1"]["gamma"],
                     params["block1"]["beta"]], axis=0)

    # Constant one-hot matrices (host-side numpy, folded at trace time).
    gid = np.arange(C_out) // cpg
    gm_np = np.eye(n_groups, dtype=np.float32)[gid]        # (C_out, G) gather
    gm = jnp.asarray(gm_np)
    sm = jnp.asarray(gm_np.T)                              # (G, C_out) scatter
    # Row-selection one-hots so per-sample GN stats don't mix samples.
    r0_np = np.kron(np.eye(Bt, dtype=np.float32), np.ones((1, L0), np.float32))
    r1_np = np.kron(np.eye(Bt, dtype=np.float32), np.ones((1, L1), np.float32))
    r0 = jnp.asarray(r0_np)                                # (Bt, Bt*L0)
    r0t = jnp.asarray(r0_np.T)                             # (Bt*L0, Bt)
    r1 = jnp.asarray(r1_np)                                # (Bt, Bt*L1)
    r1t = jnp.asarray(r1_np.T)                             # (Bt*L1, Bt)

    x_2d = x_btc.reshape(B * T, C_in)     # free row-major collapse (no copy)

    def mish(y):
        # y * tanh(softplus(y)) with a single transcendental (t = exp(-|y|)).
        t = jnp.exp(-jnp.abs(y))
        num = jnp.where(y >= 0.0, 1.0 + 2.0 * t, t * (t + 2.0))
        den = jnp.where(y >= 0.0, 1.0 + 2.0 * t + 2.0 * t * t, 2.0 + t * (t + 2.0))
        return y * num / den

    def kernel(x_ref, w0_ref, sc0_ref, w1_ref, sc1_ref, gm_ref, sm_ref,
               r0_ref, r0t_ref, r1_ref, r1t_ref,
               o_ref, xpad_ref, pat0_ref, hpad_ref, pat1_ref):

        def group_norm(conv, r_ref, rt_ref, gamma, beta, denom):
            # Per-(sample, group) stats entirely on the MXU:
            # rows gathered per sample (r_ref), channels gathered per group (gm).
            sums = jnp.dot(jnp.dot(r_ref[...], conv,
                                   preferred_element_type=jnp.float32),
                           gm_ref[...], preferred_element_type=jnp.float32)   # (Bt, G)
            mean = jnp.dot(jnp.dot(rt_ref[...], sums * (1.0 / denom),
                                   preferred_element_type=jnp.float32),
                           sm_ref[...], preferred_element_type=jnp.float32)   # (Bt*L, C)
            cen = conv - mean
            varg = jnp.dot(jnp.dot(r_ref[...], cen * cen,
                                   preferred_element_type=jnp.float32),
                           gm_ref[...], preferred_element_type=jnp.float32) * (1.0 / denom)
            inv = jnp.dot(jnp.dot(rt_ref[...], lax.rsqrt(varg + eps),
                                  preferred_element_type=jnp.float32),
                          sm_ref[...], preferred_element_type=jnp.float32)    # (Bt*L, C)
            return cen * inv * gamma + beta

        # ---- block 0: causal conv as ONE im2col matmul over Bt stacked samples ----
        zero_in = jnp.zeros((A0, C_in), jnp.float32)
        for b in range(Bt):
            base = b * P0
            xpad_ref[pl.ds(base, A0), :] = zero_in                 # pad rows only
            xpad_ref[pl.ds(base + A0, T), :] = x_ref[pl.ds(b * T, T), :]  # aligned copy
        for b in range(Bt):
            base = b * P0
            for k in range(K0):                                    # K strided taps -> patch scratch
                pat0_ref[pl.ds(b * L0, L0), pl.ds(k * C_in, C_in)] = (
                    xpad_ref[pl.ds(base + off0 + k, L0, stride=s0), :])
        conv0 = jnp.dot(pat0_ref[...], w0_ref[...],
                        preferred_element_type=jnp.float32) + sc0_ref[0:1, :]
        y0 = mish(group_norm(conv0, r0_ref, r0t_ref,
                             sc0_ref[1:2, :], sc0_ref[2:3, :], denom0))

        # ---- block 1: same pattern, intermediate stays in VMEM ----
        zero_h = jnp.zeros((A1, C_out), jnp.float32)
        for b in range(Bt):
            base = b * P1
            hpad_ref[pl.ds(base, A1), :] = zero_h                  # pad rows only
            hpad_ref[pl.ds(base + A1, L0), :] = y0[b * L0:(b + 1) * L0, :]
        for b in range(Bt):
            base = b * P1
            for k in range(K1):
                pat1_ref[pl.ds(b * L1, L1), pl.ds(k * C_out, C_out)] = (
                    hpad_ref[pl.ds(base + off1 + k, L1, stride=s1), :])
        conv1 = jnp.dot(pat1_ref[...], w1_ref[...],
                        preferred_element_type=jnp.float32) + sc1_ref[0:1, :]
        o_ref[...] = mish(group_norm(conv1, r1_ref, r1t_ref,
                                     sc1_ref[1:2, :], sc1_ref[2:3, :], denom1))

    out2d = pl.pallas_call(
        kernel,
        out_shape=jax.ShapeDtypeStruct((B * L1, C_out), jnp.float32),
        grid=(num_steps,),
        in_specs=[
            pl.BlockSpec((Bt * T, C_in), lambda i: (i, 0)),        # x (Bt samples stacked)
            pl.BlockSpec((K0 * C_in, C_out), lambda i: (0, 0)),    # w0 im2col layout
            pl.BlockSpec((3, C_out), lambda i: (0, 0)),            # b0/gamma0/beta0
            pl.BlockSpec((K1 * C_out, C_out), lambda i: (0, 0)),   # w1 im2col layout
            pl.BlockSpec((3, C_out), lambda i: (0, 0)),            # b1/gamma1/beta1
            pl.BlockSpec((C_out, n_groups), lambda i: (0, 0)),     # channel-group gather
            pl.BlockSpec((n_groups, C_out), lambda i: (0, 0)),     # channel-group scatter
            pl.BlockSpec((Bt, Bt * L0), lambda i: (0, 0)),         # row-sample gather (blk0)
            pl.BlockSpec((Bt * L0, Bt), lambda i: (0, 0)),         # row-sample scatter (blk0)
            pl.BlockSpec((Bt, Bt * L1), lambda i: (0, 0)),         # row-sample gather (blk1)
            pl.BlockSpec((Bt * L1, Bt), lambda i: (0, 0)),         # row-sample scatter (blk1)
        ],
        out_specs=pl.BlockSpec((Bt * L1, C_out), lambda i: (i, 0)),
        scratch_shapes=[
            pltpu.VMEM((Bt * P0, C_in), jnp.float32),              # left-padded block0 input
            pltpu.VMEM((Bt * L0, K0 * C_in), jnp.float32),         # block0 im2col patches
            pltpu.VMEM((Bt * P1, C_out), jnp.float32),             # left-padded block1 input
            pltpu.VMEM((Bt * L1, K1 * C_out), jnp.float32),        # block1 im2col patches
        ],
        compiler_params=pltpu.CompilerParams(
            dimension_semantics=("parallel",)),
    )(x_2d, w0_2d, sc0, w1_2d, sc1, gm, sm, r0, r0t, r1, r1t)
    return out2d.reshape(B, L1, C_out)    # free metadata reshape


def _torch_like_reference(x_btc, params, kernel_size=(5, 3), stride=(2, 2),
                          n_groups=8, eps=1e-5):
    """Pure-JAX re-implementation of the PyTorch forward, for correctness check."""
    out = jnp.transpose(x_btc, (0, 2, 1))                       # (B, C, T)
    for i, (k, s) in enumerate(zip(kernel_size, stride)):
        p = params[f"block{i}"]
        pad = k - 1
        y = lax.conv_general_dilated(out, p["w"], window_strides=(s,),
                                     padding=[(pad, pad)],
                                     dimension_numbers=("NCH", "OIH", "NCH"),
                                     precision=lax.Precision.HIGHEST)
        y = y + p["b"][None, :, None]
        last_n = (2 * pad - k) // s + 1
        if last_n > 0:
            y = y[:, :, :-last_n]
        B, C, L = y.shape
        yg = y.reshape(B, n_groups, (C // n_groups) * L)
        mean = yg.mean(-1, keepdims=True)
        var = ((yg - mean) ** 2).mean(-1, keepdims=True)
        yn = ((yg - mean) / jnp.sqrt(var + eps)).reshape(B, C, L)
        yn = yn * p["gamma"][None, :, None] + p["beta"][None, :, None]
        out = yn * jnp.tanh(jax.nn.softplus(yn))                # Mish
    return jnp.transpose(out, (0, 2, 1))


if __name__ == "__main__":
    B, T, C_in, C_out = 8, 32, 8, 32
    key = jax.random.PRNGKey(0)
    keys = jax.random.split(key, 9)
    x = jax.random.normal(keys[0], (B, T, C_in), dtype=jnp.float32)
    params = {
        "block0": {
            "w": 0.2 * jax.random.normal(keys[1], (C_out, C_in, 5), dtype=jnp.float32),
            "b": 0.1 * jax.random.normal(keys[2], (C_out,), dtype=jnp.float32),
            "gamma": 1.0 + 0.1 * jax.random.normal(keys[3], (C_out,), dtype=jnp.float32),
            "beta": 0.1 * jax.random.normal(keys[4], (C_out,), dtype=jnp.float32),
        },
        "block1": {
            "w": 0.2 * jax.random.normal(keys[5], (C_out, C_out, 3), dtype=jnp.float32),
            "b": 0.1 * jax.random.normal(keys[6], (C_out,), dtype=jnp.float32),
            "gamma": 1.0 + 0.1 * jax.random.normal(keys[7], (C_out,), dtype=jnp.float32),
            "beta": 0.1 * jax.random.normal(keys[8], (C_out,), dtype=jnp.float32),
        },
    }

    fwd = jax.jit(residual_temporal_block_forward)
    out = jax.block_until_ready(fwd(x, params))

    # T=32 -> causal stride-2 conv -> 16 -> causal stride-2 conv -> 8
    assert out.shape == (B, 8, C_out), out.shape

    ref = _torch_like_reference(x, params)
    np.testing.assert_allclose(np.asarray(out), np.asarray(ref), rtol=2e-3, atol=2e-3)

    print("KERNEL_OK")
</pallas_src>

<mosaic_0001>
module attributes {stable_mosaic.version = 11 : i64} {
  func.func @kernel(%arg0: i32, %arg1: memref<128x8xf32, #tpu.memory_space<vmem>>, %arg2: memref<40x32xf32, #tpu.memory_space<vmem>>, %arg3: memref<3x32xf32, #tpu.memory_space<vmem>>, %arg4: memref<96x32xf32, #tpu.memory_space<vmem>>, %arg5: memref<3x32xf32, #tpu.memory_space<vmem>>, %arg6: memref<32x8xf32, #tpu.memory_space<vmem>>, %arg7: memref<8x32xf32, #tpu.memory_space<vmem>>, %arg8: memref<4x64xf32, #tpu.memory_space<vmem>>, %arg9: memref<64x4xf32, #tpu.memory_space<vmem>>, %arg10: memref<4x32xf32, #tpu.memory_space<vmem>>, %arg11: memref<32x4xf32, #tpu.memory_space<vmem>>, %arg12: memref<32x32xf32, #tpu.memory_space<vmem>>, %arg13: memref<160x8xf32, #tpu.memory_space<vmem>>, %arg14: memref<64x40xf32, #tpu.memory_space<vmem>>, %arg15: memref<96x32xf32, #tpu.memory_space<vmem>>, %arg16: memref<32x96xf32, #tpu.memory_space<vmem>>) attributes {dimension_semantics = [#tpu.dimension_semantics<parallel>], iteration_bounds = array<i64: 2>, scalar_prefetch = 0 : i64, scratch_operands = 4 : i64, tpu.core_type = #tpu.core_type<tc>, window_params = [{transform_indices = @transform_0, window_bounds = array<i64: 128, 8>}, {pipeline_mode = #tpu.pipeline_mode<synchronous>, transform_indices = @transform_1, window_bounds = array<i64: 40, 32>}, {pipeline_mode = #tpu.pipeline_mode<synchronous>, transform_indices = @transform_2, window_bounds = array<i64: 3, 32>}, {pipeline_mode = #tpu.pipeline_mode<synchronous>, transform_indices = @transform_3, window_bounds = array<i64: 96, 32>}, {pipeline_mode = #tpu.pipeline_mode<synchronous>, transform_indices = @transform_4, window_bounds = array<i64: 3, 32>}, {pipeline_mode = #tpu.pipeline_mode<synchronous>, transform_indices = @transform_5, window_bounds = array<i64: 32, 8>}, {pipeline_mode = #tpu.pipeline_mode<synchronous>, transform_indices = @transform_6, window_bounds = array<i64: 8, 32>}, {pipeline_mode = #tpu.pipeline_mode<synchronous>, transform_indices = @transform_7, window_bounds = array<i64: 4, 64>}, {pipeline_mode = #tpu.pipeline_mode<synchronous>, transform_indices = @transform_8, window_bounds = array<i64: 64, 4>}, {pipeline_mode = #tpu.pipeline_mode<synchronous>, transform_indices = @transform_9, window_bounds = array<i64: 4, 32>}, {pipeline_mode = #tpu.pipeline_mode<synchronous>, transform_indices = @transform_10, window_bounds = array<i64: 32, 4>}, {transform_indices = @transform_11, window_bounds = array<i64: 32, 32>}]} {
    %cst = arith.constant 0.000000e+00 : f32
    %0 = vector.broadcast %cst : f32 to vector<8x8xf32>
    %c0 = arith.constant 0 : index
    %c0_0 = arith.constant 0 : index
    %1 = vector.load %arg13[%c0, %c0_0] : memref<160x8xf32, #tpu.memory_space<vmem>>, vector<8x8xf32>
    tpu.vector_store %arg13[%c0, %c0_0], %0 {strides = array<i32>} : memref<160x8xf32, #tpu.memory_space<vmem>>, vector<8x8xf32>,
    %c0_1 = arith.constant 0 : index
    %c0_2 = arith.constant 0 : index
    %2 = vector.load %arg1[%c0_1, %c0_2] : memref<128x8xf32, #tpu.memory_space<vmem>>, vector<32x8xf32>
    %c8 = arith.constant 8 : index
    %c0_3 = arith.constant 0 : index
    %3 = vector.load %arg13[%c8, %c0_3] : memref<160x8xf32, #tpu.memory_space<vmem>>, vector<32x8xf32>
    tpu.vector_store %arg13[%c8, %c0_3], %2 {strides = array<i32>} : memref<160x8xf32, #tpu.memory_space<vmem>>, vector<32x8xf32>,
    %c40 = arith.constant 40 : index
    %c0_4 = arith.constant 0 : index
    %4 = vector.load %arg13[%c40, %c0_4] : memref<160x8xf32, #tpu.memory_space<vmem>>, vector<8x8xf32>
    tpu.vector_store %arg13[%c40, %c0_4], %0 {strides = array<i32>} : memref<160x8xf32, #tpu.memory_space<vmem>>, vector<8x8xf32>,
    %c32 = arith.constant 32 : index
    %c0_5 = arith.constant 0 : index
    %5 = vector.load %arg1[%c32, %c0_5] : memref<128x8xf32, #tpu.memory_space<vmem>>, vector<32x8xf32>
    %c48 = arith.constant 48 : index
    %c0_6 = arith.constant 0 : index
    %6 = vector.load %arg13[%c48, %c0_6] : memref<160x8xf32, #tpu.memory_space<vmem>>, vector<32x8xf32>
    tpu.vector_store %arg13[%c48, %c0_6], %5 {strides = array<i32>} : memref<160x8xf32, #tpu.memory_space<vmem>>, vector<32x8xf32>,
    %c80 = arith.constant 80 : index
    %c0_7 = arith.constant 0 : index
    %7 = vector.load %arg13[%c80, %c0_7] : memref<160x8xf32, #tpu.memory_space<vmem>>, vector<8x8xf32>
    tpu.vector_store %arg13[%c80, %c0_7], %0 {strides = array<i32>} : memref<160x8xf32, #tpu.memory_space<vmem>>, vector<8x8xf32>,
    %c64 = arith.constant 64 : index
    %c0_8 = arith.constant 0 : index
    %8 = vector.load %arg1[%c64, %c0_8] : memref<128x8xf32, #tpu.memory_space<vmem>>, vector<32x8xf32>
    %c88 = arith.constant 88 : index
    %c0_9 = arith.constant 0 : index
    %9 = vector.load %arg13[%c88, %c0_9] : memref<160x8xf32, #tpu.memory_space<vmem>>, vector<32x8xf32>
    tpu.vector_store %arg13[%c88, %c0_9], %8 {strides = array<i32>} : memref<160x8xf32, #tpu.memory_space<vmem>>, vector<32x8xf32>,
    %c120 = arith.constant 120 : index
    %c0_10 = arith.constant 0 : index
    %10 = vector.load %arg13[%c120, %c0_10] : memref<160x8xf32, #tpu.memory_space<vmem>>, vector<8x8xf32>
    tpu.vector_store %arg13[%c120, %c0_10], %0 {strides = array<i32>} : memref<160x8xf32, #tpu.memory_space<vmem>>, vector<8x8xf32>,
    %c96 = arith.constant 96 : index
    %c0_11 = arith.constant 0 : index
    %11 = vector.load %arg1[%c96, %c0_11] : memref<128x8xf32, #tpu.memory_space<vmem>>, vector<32x8xf32>
    %c128 = arith.constant 128 : index
    %c0_12 = arith.constant 0 : index
    %12 = vector.load %arg13[%c128, %c0_12] : memref<160x8xf32, #tpu.memory_space<vmem>>, vector<32x8xf32>
    tpu.vector_store %arg13[%c128, %c0_12], %11 {strides = array<i32>} : memref<160x8xf32, #tpu.memory_space<vmem>>, vector<32x8xf32>,
    %c4 = arith.constant 4 : index
    %c0_13 = arith.constant 0 : index
    %13 = tpu.strided_load %arg13[%c4, %c0_13] {strides = array<i32: 2, 1>} : memref<160x8xf32, #tpu.memory_space<vmem>>, vector<16x8xf32>
    %c0_14 = arith.constant 0 : index
    %c0_15 = arith.constant 0 : index
    %14 = vector.load %arg14[%c0_14, %c0_15] : memref<64x40xf32, #tpu.memory_space<vmem>>, vector<16x8xf32>
    tpu.vector_store %arg14[%c0_14, %c0_15], %13 {strides = array<i32>} : memref<64x40xf32, #tpu.memory_space<vmem>>, vector<16x8xf32>,
    %c5 = arith.constant 5 : index
    %c0_16 = arith.constant 0 : index
    %15 = tpu.strided_load %arg13[%c5, %c0_16] {strides = array<i32: 2, 1>} : memref<160x8xf32, #tpu.memory_space<vmem>>, vector<16x8xf32>
    %c0_17 = arith.constant 0 : index
    %c8_18 = arith.constant 8 : index
    %16 = vector.load %arg14[%c0_17, %c8_18] : memref<64x40xf32, #tpu.memory_space<vmem>>, vector<16x8xf32>
    tpu.vector_store %arg14[%c0_17, %c8_18], %15 {strides = array<i32>} : memref<64x40xf32, #tpu.memory_space<vmem>>, vector<16x8xf32>,
    %c6 = arith.constant 6 : index
    %c0_19 = arith.constant 0 : index
    %17 = tpu.strided_load %arg13[%c6, %c0_19] {strides = array<i32: 2, 1>} : memref<160x8xf32, #tpu.memory_space<vmem>>, vector<16x8xf32>
    %c0_20 = arith.constant 0 : index
    %c16 = arith.constant 16 : index
    %18 = vector.load %arg14[%c0_20, %c16] : memref<64x40xf32, #tpu.memory_space<vmem>>, vector<16x8xf32>
    tpu.vector_store %arg14[%c0_20, %c16], %17 {strides = array<i32>} : memref<64x40xf32, #tpu.memory_space<vmem>>, vector<16x8xf32>,
    %c7 = arith.constant 7 : index
    %c0_21 = arith.constant 0 : index
    %19 = tpu.strided_load %arg13[%c7, %c0_21] {strides = array<i32: 2, 1>} : memref<160x8xf32, #tpu.memory_space<vmem>>, vector<16x8xf32>
    %c0_22 = arith.constant 0 : index
    %c24 = arith.constant 24 : index
    %20 = vector.load %arg14[%c0_22, %c24] : memref<64x40xf32, #tpu.memory_space<vmem>>, vector<16x8xf32>
    tpu.vector_store %arg14[%c0_22, %c24], %19 {strides = array<i32>} : memref<64x40xf32, #tpu.memory_space<vmem>>, vector<16x8xf32>,
    %c8_23 = arith.constant 8 : index
    %c0_24 = arith.constant 0 : index
    %21 = tpu.strided_load %arg13[%c8_23, %c0_24] {strides = array<i32: 2, 1>} : memref<160x8xf32, #tpu.memory_space<vmem>>, vector<16x8xf32>
    %c0_25 = arith.constant 0 : index
    %c32_26 = arith.constant 32 : index
    %22 = vector.load %arg14[%c0_25, %c32_26] : memref<64x40xf32, #tpu.memory_space<vmem>>, vector<16x8xf32>
    tpu.vector_store %arg14[%c0_25, %c32_26], %21 {strides = array<i32>} : memref<64x40xf32, #tpu.memory_space<vmem>>, vector<16x8xf32>,
    %c44 = arith.constant 44 : index
    %c0_27 = arith.constant 0 : index
    %23 = tpu.strided_load %arg13[%c44, %c0_27] {strides = array<i32: 2, 1>} : memref<160x8xf32, #tpu.memory_space<vmem>>, vector<16x8xf32>
    %c16_28 = arith.constant 16 : index
    %c0_29 = arith.constant 0 : index
    %24 = vector.load %arg14[%c16_28, %c0_29] : memref<64x40xf32, #tpu.memory_space<vmem>>, vector<16x8xf32>
    tpu.vector_store %arg14[%c16_28, %c0_29], %23 {strides = array<i32>} : memref<64x40xf32, #tpu.memory_space<vmem>>, vector<16x8xf32>,
    %c45 = arith.constant 45 : index
    %c0_30 = arith.constant 0 : index
    %25 = tpu.strided_load %arg13[%c45, %c0_30] {strides = array<i32: 2, 1>} : memref<160x8xf32, #tpu.memory_space<vmem>>, vector<16x8xf32>
    %c16_31 = arith.constant 16 : index
    %c8_32 = arith.constant 8 : index
    %26 = vector.load %arg14[%c16_31, %c8_32] : memref<64x40xf32, #tpu.memory_space<vmem>>, vector<16x8xf32>
    tpu.vector_store %arg14[%c16_31, %c8_32], %25 {strides = array<i32>} : memref<64x40xf32, #tpu.memory_space<vmem>>, vector<16x8xf32>,
    %c46 = arith.constant 46 : index
    %c0_33 = arith.constant 0 : index
    %27 = tpu.strided_load %arg13[%c46, %c0_33] {strides = array<i32: 2, 1>} : memref<160x8xf32, #tpu.memory_space<vmem>>, vector<16x8xf32>
    %c16_34 = arith.constant 16 : index
    %c16_35 = arith.constant 16 : index
    %28 = vector.load %arg14[%c16_34, %c16_35] : memref<64x40xf32, #tpu.memory_space<vmem>>, vector<16x8xf32>
    tpu.vector_store %arg14[%c16_34, %c16_35], %27 {strides = array<i32>} : memref<64x40xf32, #tpu.memory_space<vmem>>, vector<16x8xf32>,
    %c47 = arith.constant 47 : index
    %c0_36 = arith.constant 0 : index
    %29 = tpu.strided_load %arg13[%c47, %c0_36] {strides = array<i32: 2, 1>} : memref<160x8xf32, #tpu.memory_space<vmem>>, vector<16x8xf32>
    %c16_37 = arith.constant 16 : index
    %c24_38 = arith.constant 24 : index
    %30 = vector.load %arg14[%c16_37, %c24_38] : memref<64x40xf32, #tpu.memory_space<vmem>>, vector<16x8xf32>
    tpu.vector_store %arg14[%c16_37, %c24_38], %29 {strides = array<i32>} : memref<64x40xf32, #tpu.memory_space<vmem>>, vector<16x8xf32>,
    %c48_39 = arith.constant 48 : index
    %c0_40 = arith.constant 0 : index
    %31 = tpu.strided_load %arg13[%c48_39, %c0_40] {strides = array<i32: 2, 1>} : memref<160x8xf32, #tpu.memory_space<vmem>>, vector<16x8xf32>
    %c16_41 = arith.constant 16 : index
    %c32_42 = arith.constant 32 : index
    %32 = vector.load %arg14[%c16_41, %c32_42] : memref<64x40xf32, #tpu.memory_space<vmem>>, vector<16x8xf32>
    tpu.vector_store %arg14[%c16_41, %c32_42], %31 {strides = array<i32>} : memref<64x40xf32, #tpu.memory_space<vmem>>, vector<16x8xf32>,
    %c84 = arith.constant 84 : index
    %c0_43 = arith.constant 0 : index
    %33 = tpu.strided_load %arg13[%c84, %c0_43] {strides = array<i32: 2, 1>} : memref<160x8xf32, #tpu.memory_space<vmem>>, vector<16x8xf32>
    %c32_44 = arith.constant 32 : index
    %c0_45 = arith.constant 0 : index
    %34 = vector.load %arg14[%c32_44, %c0_45] : memref<64x40xf32, #tpu.memory_space<vmem>>, vector<16x8xf32>
    tpu.vector_store %arg14[%c32_44, %c0_45], %33 {strides = array<i32>} : memref<64x40xf32, #tpu.memory_space<vmem>>, vector<16x8xf32>,
    %c85 = arith.constant 85 : index
    %c0_46 = arith.constant 0 : index
    %35 = tpu.strided_load %arg13[%c85, %c0_46] {strides = array<i32: 2, 1>} : memref<160x8xf32, #tpu.memory_space<vmem>>, vector<16x8xf32>
    %c32_47 = arith.constant 32 : index
    %c8_48 = arith.constant 8 : index
    %36 = vector.load %arg14[%c32_47, %c8_48] : memref<64x40xf32, #tpu.memory_space<vmem>>, vector<16x8xf32>
    tpu.vector_store %arg14[%c32_47, %c8_48], %35 {strides = array<i32>} : memref<64x40xf32, #tpu.memory_space<vmem>>, vector<16x8xf32>,
    %c86 = arith.constant 86 : index
    %c0_49 = arith.constant 0 : index
    %37 = tpu.strided_load %arg13[%c86, %c0_49] {strides = array<i32: 2, 1>} : memref<160x8xf32, #tpu.memory_space<vmem>>, vector<16x8xf32>
    %c32_50 = arith.constant 32 : index
    %c16_51 = arith.constant 16 : index
    %38 = vector.load %arg14[%c32_50, %c16_51] : memref<64x40xf32, #tpu.memory_space<vmem>>, vector<16x8xf32>
    tpu.vector_store %arg14[%c32_50, %c16_51], %37 {strides = array<i32>} : memref<64x40xf32, #tpu.memory_space<vmem>>, vector<16x8xf32>,
    %c87 = arith.constant 87 : index
    %c0_52 = arith.constant 0 : index
    %39 = tpu.strided_load %arg13[%c87, %c0_52] {strides = array<i32: 2, 1>} : memref<160x8xf32, #tpu.memory_space<vmem>>, vector<16x8xf32>
    %c32_53 = arith.constant 32 : index
    %c24_54 = arith.constant 24 : index
    %40 = vector.load %arg14[%c32_53, %c24_54] : memref<64x40xf32, #tpu.memory_space<vmem>>, vector<16x8xf32>
    tpu.vector_store %arg14[%c32_53, %c24_54], %39 {strides = array<i32>} : memref<64x40xf32, #tpu.memory_space<vmem>>, vector<16x8xf32>,
    %c88_55 = arith.constant 88 : index
    %c0_56 = arith.constant 0 : index
    %41 = tpu.strided_load %arg13[%c88_55, %c0_56] {strides = array<i32: 2, 1>} : memref<160x8xf32, #tpu.memory_space<vmem>>, vector<16x8xf32>
    %c32_57 = arith.constant 32 : index
    %c32_58 = arith.constant 32 : index
    %42 = vector.load %arg14[%c32_57, %c32_58] : memref<64x40xf32, #tpu.memory_space<vmem>>, vector<16x8xf32>
    tpu.vector_store %arg14[%c32_57, %c32_58], %41 {strides = array<i32>} : memref<64x40xf32, #tpu.memory_space<vmem>>, vector<16x8xf32>,
    %c124 = arith.constant 124 : index
    %c0_59 = arith.constant 0 : index
    %43 = tpu.strided_load %arg13[%c124, %c0_59] {strides = array<i32: 2, 1>} : memref<160x8xf32, #tpu.memory_space<vmem>>, vector<16x8xf32>
    %c48_60 = arith.constant 48 : index
    %c0_61 = arith.constant 0 : index
    %44 = vector.load %arg14[%c48_60, %c0_61] : memref<64x40xf32, #tpu.memory_space<vmem>>, vector<16x8xf32>
    tpu.vector_store %arg14[%c48_60, %c0_61], %43 {strides = array<i32>} : memref<64x40xf32, #tpu.memory_space<vmem>>, vector<16x8xf32>,
    %c125 = arith.constant 125 : index
    %c0_62 = arith.constant 0 : index
    %45 = tpu.strided_load %arg13[%c125, %c0_62] {strides = array<i32: 2, 1>} : memref<160x8xf32, #tpu.memory_space<vmem>>, vector<16x8xf32>
    %c48_63 = arith.constant 48 : index
    %c8_64 = arith.constant 8 : index
    %46 = vector.load %arg14[%c48_63, %c8_64] : memref<64x40xf32, #tpu.memory_space<vmem>>, vector<16x8xf32>
    tpu.vector_store %arg14[%c48_63, %c8_64], %45 {strides = array<i32>} : memref<64x40xf32, #tpu.memory_space<vmem>>, vector<16x8xf32>,
    %c126 = arith.constant 126 : index
    %c0_65 = arith.constant 0 : index
    %47 = tpu.strided_load %arg13[%c126, %c0_65] {strides = array<i32: 2, 1>} : memref<160x8xf32, #tpu.memory_space<vmem>>, vector<16x8xf32>
    %c48_66 = arith.constant 48 : index
    %c16_67 = arith.constant 16 : index
    %48 = vector.load %arg14[%c48_66, %c16_67] : memref<64x40xf32, #tpu.memory_space<vmem>>, vector<16x8xf32>
    tpu.vector_store %arg14[%c48_66, %c16_67], %47 {strides = array<i32>} : memref<64x40xf32, #tpu.memory_space<vmem>>, vector<16x8xf32>,
    %c127 = arith.constant 127 : index
    %c0_68 = arith.constant 0 : index
    %49 = tpu.strided_load %arg13[%c127, %c0_68] {strides = array<i32: 2, 1>} : memref<160x8xf32, #tpu.memory_space<vmem>>, vector<16x8xf32>
    %c48_69 = arith.constant 48 : index
    %c24_70 = arith.constant 24 : index
    %50 = vector.load %arg14[%c48_69, %c24_70] : memref<64x40xf32, #tpu.memory_space<vmem>>, vector<16x8xf32>
    tpu.vector_store %arg14[%c48_69, %c24_70], %49 {strides = array<i32>} : memref<64x40xf32, #tpu.memory_space<vmem>>, vector<16x8xf32>,
    %c128_71 = arith.constant 128 : index
    %c0_72 = arith.constant 0 : index
    %51 = tpu.strided_load %arg13[%c128_71, %c0_72] {strides = array<i32: 2, 1>} : memref<160x8xf32, #tpu.memory_space<vmem>>, vector<16x8xf32>
    %c48_73 = arith.constant 48 : index
    %c32_74 = arith.constant 32 : index
    %52 = vector.load %arg14[%c48_73, %c32_74] : memref<64x40xf32, #tpu.memory_space<vmem>>, vector<16x8xf32>
    tpu.vector_store %arg14[%c48_73, %c32_74], %51 {strides = array<i32>} : memref<64x40xf32, #tpu.memory_space<vmem>>, vector<16x8xf32>,
    %c0_75 = arith.constant 0 : index
    %c0_76 = arith.constant 0 : index
    %53 = vector.load %arg14[%c0_75, %c0_76] : memref<64x40xf32, #tpu.memory_space<vmem>>, vector<64x40xf32>
    %c0_77 = arith.constant 0 : index
    %c0_78 = arith.constant 0 : index
    %54 = vector.load %arg2[%c0_77, %c0_78] : memref<40x32xf32, #tpu.memory_space<vmem>>, vector<40x32xf32>
    %cst_79 = arith.constant dense<0.000000e+00> : vector<64x32xf32>
    %55 = tpu.matmul %53, %54, %cst_79 {dimension_numbers = #tpu.dot_dimension_numbers<[1], [0], [0], [1], [0, 0, 1, 1], [], []>} : vector<64x40xf32>, vector<40x32xf32>, vector<64x32xf32> -> vector<64x32xf32>
    %c0_80 = arith.constant 0 : index
    %c0_81 = arith.constant 0 : index
    %56 = vector.load %arg3[%c0_80, %c0_81] : memref<3x32xf32, #tpu.memory_space<vmem>>, vector<1x32xf32>
    %57 = vector.broadcast %56 : vector<1x32xf32> to vector<64x32xf32>
    %58 = arith.addf %55, %57 : vector<64x32xf32>
    %c1 = arith.constant 1 : index
    %c0_82 = arith.constant 0 : index
    %59 = vector.load %arg3[%c1, %c0_82] : memref<3x32xf32, #tpu.memory_space<vmem>>, vector<1x32xf32>
    %c2 = arith.constant 2 : index
    %c0_83 = arith.constant 0 : index
    %60 = vector.load %arg3[%c2, %c0_83] : memref<3x32xf32, #tpu.memory_space<vmem>>, vector<1x32xf32>
    %c0_84 = arith.constant 0 : index
    %c0_85 = arith.constant 0 : index
    %61 = vector.load %arg8[%c0_84, %c0_85] : memref<4x64xf32, #tpu.memory_space<vmem>>, vector<4x64xf32>
    %cst_86 = arith.constant dense<0.000000e+00> : vector<4x32xf32>
    %62 = tpu.matmul %61, %58, %cst_86 {dimension_numbers = #tpu.dot_dimension_numbers<[1], [0], [0], [1], [0, 0, 1, 1], [], []>} : vector<4x64xf32>, vector<64x32xf32>, vector<4x32xf32> -> vector<4x32xf32>
    %c0_87 = arith.constant 0 : index
    %c0_88 = arith.constant 0 : index
    %63 = vector.load %arg6[%c0_87, %c0_88] : memref<32x8xf32, #tpu.memory_space<vmem>>, vector<32x8xf32>
    %cst_89 = arith.constant dense<0.000000e+00> : vector<4x8xf32>
    %64 = tpu.matmul %62, %63, %cst_89 {dimension_numbers = #tpu.dot_dimension_numbers<[1], [0], [0], [1], [0, 0, 1, 1], [], []>} : vector<4x32xf32>, vector<32x8xf32>, vector<4x8xf32> -> vector<4x8xf32>
    %c0_90 = arith.constant 0 : index
    %c0_91 = arith.constant 0 : index
    %65 = vector.load %arg9[%c0_90, %c0_91] : memref<64x4xf32, #tpu.memory_space<vmem>>, vector<64x4xf32>
    %cst_92 = arith.constant 1.562500e-02 : f32
    %66 = vector.broadcast %cst_92 : f32 to vector<4x8xf32>
    %67 = arith.mulf %64, %66 : vector<4x8xf32>
    %cst_93 = arith.constant dense<0.000000e+00> : vector<64x8xf32>
    %68 = tpu.matmul %65, %67, %cst_93 {dimension_numbers = #tpu.dot_dimension_numbers<[1], [0], [0], [1], [0, 0, 1, 1], [], []>} : vector<64x4xf32>, vector<4x8xf32>, vector<64x8xf32> -> vector<64x8xf32>
    %c0_94 = arith.constant 0 : index
    %c0_95 = arith.constant 0 : index
    %69 = vector.load %arg7[%c0_94, %c0_95] : memref<8x32xf32, #tpu.memory_space<vmem>>, vector<8x32xf32>
    %cst_96 = arith.constant dense<0.000000e+00> : vector<64x32xf32>
    %70 = tpu.matmul %68, %69, %cst_96 {dimension_numbers = #tpu.dot_dimension_numbers<[1], [0], [0], [1], [0, 0, 1, 1], [], []>} : vector<64x8xf32>, vector<8x32xf32>, vector<64x32xf32> -> vector<64x32xf32>
    %71 = arith.subf %58, %70 : vector<64x32xf32>
    %c0_97 = arith.constant 0 : index
    %c0_98 = arith.constant 0 : index
    %72 = vector.load %arg8[%c0_97, %c0_98] : memref<4x64xf32, #tpu.memory_space<vmem>>, vector<4x64xf32>
    %73 = arith.mulf %71, %71 : vector<64x32xf32>
    %cst_99 = arith.constant dense<0.000000e+00> : vector<4x32xf32>
    %74 = tpu.matmul %72, %73, %cst_99 {dimension_numbers = #tpu.dot_dimension_numbers<[1], [0], [0], [1], [0, 0, 1, 1], [], []>} : vector<4x64xf32>, vector<64x32xf32>, vector<4x32xf32> -> vector<4x32xf32>
    %c0_100 = arith.constant 0 : index
    %c0_101 = arith.constant 0 : index
    %75 = vector.load %arg6[%c0_100, %c0_101] : memref<32x8xf32, #tpu.memory_space<vmem>>, vector<32x8xf32>
    %cst_102 = arith.constant dense<0.000000e+00> : vector<4x8xf32>
    %76 = tpu.matmul %74, %75, %cst_102 {dimension_numbers = #tpu.dot_dimension_numbers<[1], [0], [0], [1], [0, 0, 1, 1], [], []>} : vector<4x32xf32>, vector<32x8xf32>, vector<4x8xf32> -> vector<4x8xf32>
    %cst_103 = arith.constant 1.562500e-02 : f32
    %77 = vector.broadcast %cst_103 : f32 to vector<4x8xf32>
    %78 = arith.mulf %76, %77 : vector<4x8xf32>
    %c0_104 = arith.constant 0 : index
    %c0_105 = arith.constant 0 : index
    %79 = vector.load %arg9[%c0_104, %c0_105] : memref<64x4xf32, #tpu.memory_space<vmem>>, vector<64x4xf32>
    %cst_106 = arith.constant 9.99999974E-6 : f32
    %80 = vector.broadcast %cst_106 : f32 to vector<4x8xf32>
    %81 = arith.addf %78, %80 : vector<4x8xf32>
    %82 = math.rsqrt %81 : vector<4x8xf32>
    %cst_107 = arith.constant dense<0.000000e+00> : vector<64x8xf32>
    %83 = tpu.matmul %79, %82, %cst_107 {dimension_numbers = #tpu.dot_dimension_numbers<[1], [0], [0], [1], [0, 0, 1, 1], [], []>} : vector<64x4xf32>, vector<4x8xf32>, vector<64x8xf32> -> vector<64x8xf32>
    %c0_108 = arith.constant 0 : index
    %c0_109 = arith.constant 0 : index
    %84 = vector.load %arg7[%c0_108, %c0_109] : memref<8x32xf32, #tpu.memory_space<vmem>>, vector<8x32xf32>
    %cst_110 = arith.constant dense<0.000000e+00> : vector<64x32xf32>
    %85 = tpu.matmul %83, %84, %cst_110 {dimension_numbers = #tpu.dot_dimension_numbers<[1], [0], [0], [1], [0, 0, 1, 1], [], []>} : vector<64x8xf32>, vector<8x32xf32>, vector<64x32xf32> -> vector<64x32xf32>
    %86 = arith.mulf %71, %85 : vector<64x32xf32>
    %87 = vector.broadcast %59 : vector<1x32xf32> to vector<64x32xf32>
    %88 = arith.mulf %86, %87 : vector<64x32xf32>
    %89 = vector.broadcast %60 : vector<1x32xf32> to vector<64x32xf32>
    %90 = arith.addf %88, %89 : vector<64x32xf32>
    %91 = math.absf %90 : vector<64x32xf32>
    %cst_111 = arith.constant 0.000000e+00 : f32
    %92 = vector.broadcast %cst_111 : f32 to vector<64x32xf32>
    %93 = arith.subf %92, %91 : vector<64x32xf32>
    %94 = math.exp %93 : vector<64x32xf32>
    %cst_112 = arith.constant 0.000000e+00 : f32
    %95 = vector.broadcast %cst_112 : f32 to vector<64x32xf32>
    %96 = arith.cmpf oge, %90, %95 : vector<64x32xf32>
    %cst_113 = arith.constant 2.000000e+00 : f32
    %97 = vector.broadcast %cst_113 : f32 to vector<64x32xf32>
    %98 = arith.mulf %97, %94 : vector<64x32xf32>
    %cst_114 = arith.constant 1.000000e+00 : f32
    %99 = vector.broadcast %cst_114 : f32 to vector<64x32xf32>
    %100 = arith.addf %99, %98 : vector<64x32xf32>
    %cst_115 = arith.constant 2.000000e+00 : f32
    %101 = vector.broadcast %cst_115 : f32 to vector<64x32xf32>
    %102 = arith.addf %94, %101 : vector<64x32xf32>
    %103 = arith.mulf %94, %102 : vector<64x32xf32>
    %104 = arith.select %96, %100, %103 : vector<64x32xi1>, vector<64x32xf32>
    %cst_116 = arith.constant 0.000000e+00 : f32
    %105 = vector.broadcast %cst_116 : f32 to vector<64x32xf32>
    %106 = arith.cmpf oge, %90, %105 : vector<64x32xf32>
    %cst_117 = arith.constant 2.000000e+00 : f32
    %107 = vector.broadcast %cst_117 : f32 to vector<64x32xf32>
    %108 = arith.mulf %107, %94 : vector<64x32xf32>
    %cst_118 = arith.constant 1.000000e+00 : f32
    %109 = vector.broadcast %cst_118 : f32 to vector<64x32xf32>
    %110 = arith.addf %109, %108 : vector<64x32xf32>
    %cst_119 = arith.constant 2.000000e+00 : f32
    %111 = vector.broadcast %cst_119 : f32 to vector<64x32xf32>
    %112 = arith.mulf %111, %94 : vector<64x32xf32>
    %113 = arith.mulf %112, %94 : vector<64x32xf32>
    %114 = arith.addf %110, %113 : vector<64x32xf32>
    %cst_120 = arith.constant 2.000000e+00 : f32
    %115 = vector.broadcast %cst_120 : f32 to vector<64x32xf32>
    %116 = arith.addf %94, %115 : vector<64x32xf32>
    %117 = arith.mulf %94, %116 : vector<64x32xf32>
    %cst_121 = arith.constant 2.000000e+00 : f32
    %118 = vector.broadcast %cst_121 : f32 to vector<64x32xf32>
    %119 = arith.addf %118, %117 : vector<64x32xf32>
    %120 = arith.select %106, %114, %119 : vector<64x32xi1>, vector<64x32xf32>
    %121 = arith.mulf %90, %104 : vector<64x32xf32>
    %122 = arith.divf %121, %120 : vector<64x32xf32>
    %cst_122 = arith.constant 0.000000e+00 : f32
    %123 = vector.broadcast %cst_122 : f32 to vector<8x32xf32>
    %c0_123 = arith.constant 0 : index
    %c0_124 = arith.constant 0 : index
    %124 = vector.load %arg15[%c0_123, %c0_124] : memref<96x32xf32, #tpu.memory_space<vmem>>, vector<8x32xf32>
    tpu.vector_store %arg15[%c0_123, %c0_124], %123 {strides = array<i32>} : memref<96x32xf32, #tpu.memory_space<vmem>>, vector<8x32xf32>,
    %125 = vector.extract_strided_slice %122 {offsets = [0, 0], sizes = [16, 32], strides = [1, 1]} : vector<64x32xf32> to vector<16x32xf32>
    %c8_125 = arith.constant 8 : index
    %c0_126 = arith.constant 0 : index
    %126 = vector.load %arg15[%c8_125, %c0_126] : memref<96x32xf32, #tpu.memory_space<vmem>>, vector<16x32xf32>
    tpu.vector_store %arg15[%c8_125, %c0_126], %125 {strides = array<i32>} : memref<96x32xf32, #tpu.memory_space<vmem>>, vector<16x32xf32>,
    %c24_127 = arith.constant 24 : index
    %c0_128 = arith.constant 0 : index
    %127 = vector.load %arg15[%c24_127, %c0_128] : memref<96x32xf32, #tpu.memory_space<vmem>>, vector<8x32xf32>
    tpu.vector_store %arg15[%c24_127, %c0_128], %123 {strides = array<i32>} : memref<96x32xf32, #tpu.memory_space<vmem>>, vector<8x32xf32>,
    %128 = vector.extract_strided_slice %122 {offsets = [16, 0], sizes = [16, 32], strides = [1, 1]} : vector<64x32xf32> to vector<16x32xf32>
    %c32_129 = arith.constant 32 : index
    %c0_130 = arith.constant 0 : index
    %129 = vector.load %arg15[%c32_129, %c0_130] : memref<96x32xf32, #tpu.memory_space<vmem>>, vector<16x32xf32>
    tpu.vector_store %arg15[%c32_129, %c0_130], %128 {strides = array<i32>} : memref<96x32xf32, #tpu.memory_space<vmem>>, vector<16x32xf32>,
    %c48_131 = arith.constant 48 : index
    %c0_132 = arith.constant 0 : index
    %130 = vector.load %arg15[%c48_131, %c0_132] : memref<96x32xf32, #tpu.memory_space<vmem>>, vector<8x32xf32>
    tpu.vector_store %arg15[%c48_131, %c0_132], %123 {strides = array<i32>} : memref<96x32xf32, #tpu.memory_space<vmem>>, vector<8x32xf32>,
    %131 = vector.extract_strided_slice %122 {offsets = [32, 0], sizes = [16, 32], strides = [1, 1]} : vector<64x32xf32> to vector<16x32xf32>
    %c56 = arith.constant 56 : index
    %c0_133 = arith.constant 0 : index
    %132 = vector.load %arg15[%c56, %c0_133] : memref<96x32xf32, #tpu.memory_space<vmem>>, vector<16x32xf32>
    tpu.vector_store %arg15[%c56, %c0_133], %131 {strides = array<i32>} : memref<96x32xf32, #tpu.memory_space<vmem>>, vector<16x32xf32>,
    %c72 = arith.constant 72 : index
    %c0_134 = arith.constant 0 : index
    %133 = vector.load %arg15[%c72, %c0_134] : memref<96x32xf32, #tpu.memory_space<vmem>>, vector<8x32xf32>
    tpu.vector_store %arg15[%c72, %c0_134], %123 {strides = array<i32>} : memref<96x32xf32, #tpu.memory_space<vmem>>, vector<8x32xf32>,
    %134 = vector.extract_strided_slice %122 {offsets = [48, 0], sizes = [16, 32], strides = [1, 1]} : vector<64x32xf32> to vector<16x32xf32>
    %c80_135 = arith.constant 80 : index
    %c0_136 = arith.constant 0 : index
    %135 = vector.load %arg15[%c80_135, %c0_136] : memref<96x32xf32, #tpu.memory_space<vmem>>, vector<16x32xf32>
    tpu.vector_store %arg15[%c80_135, %c0_136], %134 {strides = array<i32>} : memref<96x32xf32, #tpu.memory_space<vmem>>, vector<16x32xf32>,
    %c6_137 = arith.constant 6 : index
    %c0_138 = arith.constant 0 : index
    %136 = tpu.strided_load %arg15[%c6_137, %c0_138] {strides = array<i32: 2, 1>} : memref<96x32xf32, #tpu.memory_space<vmem>>, vector<8x32xf32>
    %c0_139 = arith.constant 0 : index
    %c0_140 = arith.constant 0 : index
    %137 = vector.load %arg16[%c0_139, %c0_140] : memref<32x96xf32, #tpu.memory_space<vmem>>, vector<8x32xf32>
    tpu.vector_store %arg16[%c0_139, %c0_140], %136 {strides = array<i32>} : memref<32x96xf32, #tpu.memory_space<vmem>>, vector<8x32xf32>,
    %c7_141 = arith.constant 7 : index
    %c0_142 = arith.constant 0 : index
    %138 = tpu.strided_load %arg15[%c7_141, %c0_142] {strides = array<i32: 2, 1>} : memref<96x32xf32, #tpu.memory_space<vmem>>, vector<8x32xf32>
    %c0_143 = arith.constant 0 : index
    %c32_144 = arith.constant 32 : index
    %139 = vector.load %arg16[%c0_143, %c32_144] : memref<32x96xf32, #tpu.memory_space<vmem>>, vector<8x32xf32>
    tpu.vector_store %arg16[%c0_143, %c32_144], %138 {strides = array<i32>} : memref<32x96xf32, #tpu.memory_space<vmem>>, vector<8x32xf32>,
    %c8_145 = arith.constant 8 : index
    %c0_146 = arith.constant 0 : index
    %140 = tpu.strided_load %arg15[%c8_145, %c0_146] {strides = array<i32: 2, 1>} : memref<96x32xf32, #tpu.memory_space<vmem>>, vector<8x32xf32>
    %c0_147 = arith.constant 0 : index
    %c64_148 = arith.constant 64 : index
    %141 = vector.load %arg16[%c0_147, %c64_148] : memref<32x96xf32, #tpu.memory_space<vmem>>, vector<8x32xf32>
    tpu.vector_store %arg16[%c0_147, %c64_148], %140 {strides = array<i32>} : memref<32x96xf32, #tpu.memory_space<vmem>>, vector<8x32xf32>,
    %c30 = arith.constant 30 : index
    %c0_149 = arith.constant 0 : index
    %142 = tpu.strided_load %arg15[%c30, %c0_149] {strides = array<i32: 2, 1>} : memref<96x32xf32, #tpu.memory_space<vmem>>, vector<8x32xf32>
    %c8_150 = arith.constant 8 : index
    %c0_151 = arith.constant 0 : index
    %143 = vector.load %arg16[%c8_150, %c0_151] : memref<32x96xf32, #tpu.memory_space<vmem>>, vector<8x32xf32>
    tpu.vector_store %arg16[%c8_150, %c0_151], %142 {strides = array<i32>} : memref<32x96xf32, #tpu.memory_space<vmem>>, vector<8x32xf32>,
    %c31 = arith.constant 31 : index
    %c0_152 = arith.constant 0 : index
    %144 = tpu.strided_load %arg15[%c31, %c0_152] {strides = array<i32: 2, 1>} : memref<96x32xf32, #tpu.memory_space<vmem>>, vector<8x32xf32>
    %c8_153 = arith.constant 8 : index
    %c32_154 = arith.constant 32 : index
    %145 = vector.load %arg16[%c8_153, %c32_154] : memref<32x96xf32, #tpu.memory_space<vmem>>, vector<8x32xf32>
    tpu.vector_store %arg16[%c8_153, %c32_154], %144 {strides = array<i32>} : memref<32x96xf32, #tpu.memory_space<vmem>>, vector<8x32xf32>,
    %c32_155 = arith.constant 32 : index
    %c0_156 = arith.constant 0 : index
    %146 = tpu.strided_load %arg15[%c32_155, %c0_156] {strides = array<i32: 2, 1>} : memref<96x32xf32, #tpu.memory_space<vmem>>, vector<8x32xf32>
    %c8_157 = arith.constant 8 : index
    %c64_158 = arith.constant 64 : index
    %147 = vector.load %arg16[%c8_157, %c64_158] : memref<32x96xf32, #tpu.memory_space<vmem>>, vector<8x32xf32>
    tpu.vector_store %arg16[%c8_157, %c64_158], %146 {strides = array<i32>} : memref<32x96xf32, #tpu.memory_space<vmem>>, vector<8x32xf32>,
    %c54 = arith.constant 54 : index
    %c0_159 = arith.constant 0 : index
    %148 = tpu.strided_load %arg15[%c54, %c0_159] {strides = array<i32: 2, 1>} : memref<96x32xf32, #tpu.memory_space<vmem>>, vector<8x32xf32>
    %c16_160 = arith.constant 16 : index
    %c0_161 = arith.constant 0 : index
    %149 = vector.load %arg16[%c16_160, %c0_161] : memref<32x96xf32, #tpu.memory_space<vmem>>, vector<8x32xf32>
    tpu.vector_store %arg16[%c16_160, %c0_161], %148 {strides = array<i32>} : memref<32x96xf32, #tpu.memory_space<vmem>>, vector<8x32xf32>,
    %c55 = arith.constant 55 : index
    %c0_162 = arith.constant 0 : index
    %150 = tpu.strided_load %arg15[%c55, %c0_162] {strides = array<i32: 2, 1>} : memref<96x32xf32, #tpu.memory_space<vmem>>, vector<8x32xf32>
    %c16_163 = arith.constant 16 : index
    %c32_164 = arith.constant 32 : index
    %151 = vector.load %arg16[%c16_163, %c32_164] : memref<32x96xf32, #tpu.memory_space<vmem>>, vector<8x32xf32>
    tpu.vector_store %arg16[%c16_163, %c32_164], %150 {strides = array<i32>} : memref<32x96xf32, #tpu.memory_space<vmem>>, vector<8x32xf32>,
    %c56_165 = arith.constant 56 : index
    %c0_166 = arith.constant 0 : index
    %152 = tpu.strided_load %arg15[%c56_165, %c0_166] {strides = array<i32: 2, 1>} : memref<96x32xf32, #tpu.memory_space<vmem>>, vector<8x32xf32>
    %c16_167 = arith.constant 16 : index
    %c64_168 = arith.constant 64 : index
    %153 = vector.load %arg16[%c16_167, %c64_168] : memref<32x96xf32, #tpu.memory_space<vmem>>, vector<8x32xf32>
    tpu.vector_store %arg16[%c16_167, %c64_168], %152 {strides = array<i32>} : memref<32x96xf32, #tpu.memory_space<vmem>>, vector<8x32xf32>,
    %c78 = arith.constant 78 : index
    %c0_169 = arith.constant 0 : index
    %154 = tpu.strided_load %arg15[%c78, %c0_169] {strides = array<i32: 2, 1>} : memref<96x32xf32, #tpu.memory_space<vmem>>, vector<8x32xf32>
    %c24_170 = arith.constant 24 : index
    %c0_171 = arith.constant 0 : index
    %155 = vector.load %arg16[%c24_170, %c0_171] : memref<32x96xf32, #tpu.memory_space<vmem>>, vector<8x32xf32>
    tpu.vector_store %arg16[%c24_170, %c0_171], %154 {strides = array<i32>} : memref<32x96xf32, #tpu.memory_space<vmem>>, vector<8x32xf32>,
    %c79 = arith.constant 79 : index
    %c0_172 = arith.constant 0 : index
    %156 = tpu.strided_load %arg15[%c79, %c0_172] {strides = array<i32: 2, 1>} : memref<96x32xf32, #tpu.memory_space<vmem>>, vector<8x32xf32>
    %c24_173 = arith.constant 24 : index
    %c32_174 = arith.constant 32 : index
    %157 = vector.load %arg16[%c24_173, %c32_174] : memref<32x96xf32, #tpu.memory_space<vmem>>, vector<8x32xf32>
    tpu.vector_store %arg16[%c24_173, %c32_174], %156 {strides = array<i32>} : memref<32x96xf32, #tpu.memory_space<vmem>>, vector<8x32xf32>,
    %c80_175 = arith.constant 80 : index
    %c0_176 = arith.constant 0 : index
    %158 = tpu.strided_load %arg15[%c80_175, %c0_176] {strides = array<i32: 2, 1>} : memref<96x32xf32, #tpu.memory_space<vmem>>, vector<8x32xf32>
    %c24_177 = arith.constant 24 : index
    %c64_178 = arith.constant 64 : index
    %159 = vector.load %arg16[%c24_177, %c64_178] : memref<32x96xf32, #tpu.memory_space<vmem>>, vector<8x32xf32>
    tpu.vector_store %arg16[%c24_177, %c64_178], %158 {strides = array<i32>} : memref<32x96xf32, #tpu.memory_space<vmem>>, vector<8x32xf32>,
    %c0_179 = arith.constant 0 : index
    %c0_180 = arith.constant 0 : index
    %160 = vector.load %arg16[%c0_179, %c0_180] : memref<32x96xf32, #tpu.memory_space<vmem>>, vector<32x96xf32>
    %c0_181 = arith.constant 0 : index
    %c0_182 = arith.constant 0 : index
    %161 = vector.load %arg4[%c0_181, %c0_182] : memref<96x32xf32, #tpu.memory_space<vmem>>, vector<96x32xf32>
    %cst_183 = arith.constant dense<0.000000e+00> : vector<32x32xf32>
    %162 = tpu.matmul %160, %161, %cst_183 {dimension_numbers = #tpu.dot_dimension_numbers<[1], [0], [0], [1], [0, 0, 1, 1], [], []>} : vector<32x96xf32>, vector<96x32xf32>, vector<32x32xf32> -> vector<32x32xf32>
    %c0_184 = arith.constant 0 : index
    %c0_185 = arith.constant 0 : index
    %163 = vector.load %arg5[%c0_184, %c0_185] : memref<3x32xf32, #tpu.memory_space<vmem>>, vector<1x32xf32>
    %164 = vector.broadcast %163 : vector<1x32xf32> to vector<32x32xf32>
    %165 = arith.addf %162, %164 : vector<32x32xf32>
    %c1_186 = arith.constant 1 : index
    %c0_187 = arith.constant 0 : index
    %166 = vector.load %arg5[%c1_186, %c0_187] : memref<3x32xf32, #tpu.memory_space<vmem>>, vector<1x32xf32>
    %c2_188 = arith.constant 2 : index
    %c0_189 = arith.constant 0 : index
    %167 = vector.load %arg5[%c2_188, %c0_189] : memref<3x32xf32, #tpu.memory_space<vmem>>, vector<1x32xf32>
    %c0_190 = arith.constant 0 : index
    %c0_191 = arith.constant 0 : index
    %168 = vector.load %arg10[%c0_190, %c0_191] : memref<4x32xf32, #tpu.memory_space<vmem>>, vector<4x32xf32>
    %cst_192 = arith.constant dense<0.000000e+00> : vector<4x32xf32>
    %169 = tpu.matmul %168, %165, %cst_192 {dimension_numbers = #tpu.dot_dimension_numbers<[1], [0], [0], [1], [0, 0, 1, 1], [], []>} : vector<4x32xf32>, vector<32x32xf32>, vector<4x32xf32> -> vector<4x32xf32>
    %c0_193 = arith.constant 0 : index
    %c0_194 = arith.constant 0 : index
    %170 = vector.load %arg6[%c0_193, %c0_194] : memref<32x8xf32, #tpu.memory_space<vmem>>, vector<32x8xf32>
    %cst_195 = arith.constant dense<0.000000e+00> : vector<4x8xf32>
    %171 = tpu.matmul %169, %170, %cst_195 {dimension_numbers = #tpu.dot_dimension_numbers<[1], [0], [0], [1], [0, 0, 1, 1], [], []>} : vector<4x32xf32>, vector<32x8xf32>, vector<4x8xf32> -> vector<4x8xf32>
    %c0_196 = arith.constant 0 : index
    %c0_197 = arith.constant 0 : index
    %172 = vector.load %arg11[%c0_196, %c0_197] : memref<32x4xf32, #tpu.memory_space<vmem>>, vector<32x4xf32>
    %cst_198 = arith.constant 3.125000e-02 : f32
    %173 = vector.broadcast %cst_198 : f32 to vector<4x8xf32>
    %174 = arith.mulf %171, %173 : vector<4x8xf32>
    %cst_199 = arith.constant dense<0.000000e+00> : vector<32x8xf32>
    %175 = tpu.matmul %172, %174, %cst_199 {dimension_numbers = #tpu.dot_dimension_numbers<[1], [0], [0], [1], [0, 0, 1, 1], [], []>} : vector<32x4xf32>, vector<4x8xf32>, vector<32x8xf32> -> vector<32x8xf32>
    %c0_200 = arith.constant 0 : index
    %c0_201 = arith.constant 0 : index
    %176 = vector.load %arg7[%c0_200, %c0_201] : memref<8x32xf32, #tpu.memory_space<vmem>>, vector<8x32xf32>
    %cst_202 = arith.constant dense<0.000000e+00> : vector<32x32xf32>
    %177 = tpu.matmul %175, %176, %cst_202 {dimension_numbers = #tpu.dot_dimension_numbers<[1], [0], [0], [1], [0, 0, 1, 1], [], []>} : vector<32x8xf32>, vector<8x32xf32>, vector<32x32xf32> -> vector<32x32xf32>
    %178 = arith.subf %165, %177 : vector<32x32xf32>
    %c0_203 = arith.constant 0 : index
    %c0_204 = arith.constant 0 : index
    %179 = vector.load %arg10[%c0_203, %c0_204] : memref<4x32xf32, #tpu.memory_space<vmem>>, vector<4x32xf32>
    %180 = arith.mulf %178, %178 : vector<32x32xf32>
    %cst_205 = arith.constant dense<0.000000e+00> : vector<4x32xf32>
    %181 = tpu.matmul %179, %180, %cst_205 {dimension_numbers = #tpu.dot_dimension_numbers<[1], [0], [0], [1], [0, 0, 1, 1], [], []>} : vector<4x32xf32>, vector<32x32xf32>, vector<4x32xf32> -> vector<4x32xf32>
    %c0_206 = arith.constant 0 : index
    %c0_207 = arith.constant 0 : index
    %182 = vector.load %arg6[%c0_206, %c0_207] : memref<32x8xf32, #tpu.memory_space<vmem>>, vector<32x8xf32>
    %cst_208 = arith.constant dense<0.000000e+00> : vector<4x8xf32>
    %183 = tpu.matmul %181, %182, %cst_208 {dimension_numbers = #tpu.dot_dimension_numbers<[1], [0], [0], [1], [0, 0, 1, 1], [], []>} : vector<4x32xf32>, vector<32x8xf32>, vector<4x8xf32> -> vector<4x8xf32>
    %cst_209 = arith.constant 3.125000e-02 : f32
    %184 = vector.broadcast %cst_209 : f32 to vector<4x8xf32>
    %185 = arith.mulf %183, %184 : vector<4x8xf32>
    %c0_210 = arith.constant 0 : index
    %c0_211 = arith.constant 0 : index
    %186 = vector.load %arg11[%c0_210, %c0_211] : memref<32x4xf32, #tpu.memory_space<vmem>>, vector<32x4xf32>
    %cst_212 = arith.constant 9.99999974E-6 : f32
    %187 = vector.broadcast %cst_212 : f32 to vector<4x8xf32>
    %188 = arith.addf %185, %187 : vector<4x8xf32>
    %189 = math.rsqrt %188 : vector<4x8xf32>
    %cst_213 = arith.constant dense<0.000000e+00> : vector<32x8xf32>
    %190 = tpu.matmul %186, %189, %cst_213 {dimension_numbers = #tpu.dot_dimension_numbers<[1], [0], [0], [1], [0, 0, 1, 1], [], []>} : vector<32x4xf32>, vector<4x8xf32>, vector<32x8xf32> -> vector<32x8xf32>
    %c0_214 = arith.constant 0 : index
    %c0_215 = arith.constant 0 : index
    %191 = vector.load %arg7[%c0_214, %c0_215] : memref<8x32xf32, #tpu.memory_space<vmem>>, vector<8x32xf32>
    %cst_216 = arith.constant dense<0.000000e+00> : vector<32x32xf32>
    %192 = tpu.matmul %190, %191, %cst_216 {dimension_numbers = #tpu.dot_dimension_numbers<[1], [0], [0], [1], [0, 0, 1, 1], [], []>} : vector<32x8xf32>, vector<8x32xf32>, vector<32x32xf32> -> vector<32x32xf32>
    %193 = arith.mulf %178, %192 : vector<32x32xf32>
    %194 = vector.broadcast %166 : vector<1x32xf32> to vector<32x32xf32>
    %195 = arith.mulf %193, %194 : vector<32x32xf32>
    %196 = vector.broadcast %167 : vector<1x32xf32> to vector<32x32xf32>
    %197 = arith.addf %195, %196 : vector<32x32xf32>
    %198 = math.absf %197 : vector<32x32xf32>
    %cst_217 = arith.constant 0.000000e+00 : f32
    %199 = vector.broadcast %cst_217 : f32 to vector<32x32xf32>
    %200 = arith.subf %199, %198 : vector<32x32xf32>
    %201 = math.exp %200 : vector<32x32xf32>
    %cst_218 = arith.constant 0.000000e+00 : f32
    %202 = vector.broadcast %cst_218 : f32 to vector<32x32xf32>
    %203 = arith.cmpf oge, %197, %202 : vector<32x32xf32>
    %cst_219 = arith.constant 2.000000e+00 : f32
    %204 = vector.broadcast %cst_219 : f32 to vector<32x32xf32>
    %205 = arith.mulf %204, %201 : vector<32x32xf32>
    %cst_220 = arith.constant 1.000000e+00 : f32
    %206 = vector.broadcast %cst_220 : f32 to vector<32x32xf32>
    %207 = arith.addf %206, %205 : vector<32x32xf32>
    %cst_221 = arith.constant 2.000000e+00 : f32
    %208 = vector.broadcast %cst_221 : f32 to vector<32x32xf32>
    %209 = arith.addf %201, %208 : vector<32x32xf32>
    %210 = arith.mulf %201, %209 : vector<32x32xf32>
    %211 = arith.select %203, %207, %210 : vector<32x32xi1>, vector<32x32xf32>
    %cst_222 = arith.constant 0.000000e+00 : f32
    %212 = vector.broadcast %cst_222 : f32 to vector<32x32xf32>
    %213 = arith.cmpf oge, %197, %212 : vector<32x32xf32>
    %cst_223 = arith.constant 2.000000e+00 : f32
    %214 = vector.broadcast %cst_223 : f32 to vector<32x32xf32>
    %215 = arith.mulf %214, %201 : vector<32x32xf32>
    %cst_224 = arith.constant 1.000000e+00 : f32
    %216 = vector.broadcast %cst_224 : f32 to vector<32x32xf32>
    %217 = arith.addf %216, %215 : vector<32x32xf32>
    %cst_225 = arith.constant 2.000000e+00 : f32
    %218 = vector.broadcast %cst_225 : f32 to vector<32x32xf32>
    %219 = arith.mulf %218, %201 : vector<32x32xf32>
    %220 = arith.mulf %219, %201 : vector<32x32xf32>
    %221 = arith.addf %217, %220 : vector<32x32xf32>
    %cst_226 = arith.constant 2.000000e+00 : f32
    %222 = vector.broadcast %cst_226 : f32 to vector<32x32xf32>
    %223 = arith.addf %201, %222 : vector<32x32xf32>
    %224 = arith.mulf %201, %223 : vector<32x32xf32>
    %cst_227 = arith.constant 2.000000e+00 : f32
    %225 = vector.broadcast %cst_227 : f32 to vector<32x32xf32>
    %226 = arith.addf %225, %224 : vector<32x32xf32>
    %227 = arith.select %213, %221, %226 : vector<32x32xi1>, vector<32x32xf32>
    %228 = arith.mulf %197, %211 : vector<32x32xf32>
    %229 = arith.divf %228, %227 : vector<32x32xf32>
    %c0_228 = arith.constant 0 : index
    %c0_229 = arith.constant 0 : index
    %230 = vector.load %arg12[%c0_228, %c0_229] : memref<32x32xf32, #tpu.memory_space<vmem>>, vector<32x32xf32>
    tpu.vector_store %arg12[%c0_228, %c0_229], %229 {strides = array<i32>} : memref<32x32xf32, #tpu.memory_space<vmem>>, vector<32x32xf32>,
    return
  }
  func.func @transform_0(%arg0: i32) -> (i32, i32) {
    %c0_i32 = arith.constant 0 : i32
    %c0_i32_0 = arith.constant 0 : i32
    return %arg0, %c0_i32 : i32, i32
  }
  func.func @transform_1(%arg0: i32) -> (i32, i32) {
    %c0_i32 = arith.constant 0 : i32
    %c0_i32_0 = arith.constant 0 : i32
    %c0_i32_1 = arith.constant 0 : i32
    return %c0_i32, %c0_i32_0 : i32, i32
  }
  func.func @transform_2(%arg0: i32) -> (i32, i32) {
    %c0_i32 = arith.constant 0 : i32
    %c0_i32_0 = arith.constant 0 : i32
    %c0_i32_1 = arith.constant 0 : i32
    return %c0_i32, %c0_i32_0 : i32, i32
  }
  func.func @transform_3(%arg0: i32) -> (i32, i32) {
    %c0_i32 = arith.constant 0 : i32
    %c0_i32_0 = arith.constant 0 : i32
    %c0_i32_1 = arith.constant 0 : i32
    return %c0_i32, %c0_i32_0 : i32, i32
  }
  func.func @transform_4(%arg0: i32) -> (i32, i32) {
    %c0_i32 = arith.constant 0 : i32
    %c0_i32_0 = arith.constant 0 : i32
    %c0_i32_1 = arith.constant 0 : i32
    return %c0_i32, %c0_i32_0 : i32, i32
  }
  func.func @transform_5(%arg0: i32) -> (i32, i32) {
    %c0_i32 = arith.constant 0 : i32
    %c0_i32_0 = arith.constant 0 : i32
    %c0_i32_1 = arith.constant 0 : i32
    return %c0_i32, %c0_i32_0 : i32, i32
  }
  func.func @transform_6(%arg0: i32) -> (i32, i32) {
    %c0_i32 = arith.constant 0 : i32
    %c0_i32_0 = arith.constant 0 : i32
    %c0_i32_1 = arith.constant 0 : i32
    return %c0_i32, %c0_i32_0 : i32, i32
  }
  func.func @transform_7(%arg0: i32) -> (i32, i32) {
    %c0_i32 = arith.constant 0 : i32
    %c0_i32_0 = arith.constant 0 : i32
    %c0_i32_1 = arith.constant 0 : i32
    return %c0_i32, %c0_i32_0 : i32, i32
  }
  func.func @transform_8(%arg0: i32) -> (i32, i32) {
    %c0_i32 = arith.constant 0 : i32
    %c0_i32_0 = arith.constant 0 : i32
    %c0_i32_1 = arith.constant 0 : i32
    return %c0_i32, %c0_i32_0 : i32, i32
  }
  func.func @transform_9(%arg0: i32) -> (i32, i32) {
    %c0_i32 = arith.constant 0 : i32
    %c0_i32_0 = arith.constant 0 : i32
    %c0_i32_1 = arith.constant 0 : i32
    return %c0_i32, %c0_i32_0 : i32, i32
  }
  func.func @transform_10(%arg0: i32) -> (i32, i32) {
    %c0_i32 = arith.constant 0 : i32
    %c0_i32_0 = arith.constant 0 : i32
    %c0_i32_1 = arith.constant 0 : i32
    return %c0_i32, %c0_i32_0 : i32, i32
  }
  func.func @transform_11(%arg0: i32) -> (i32, i32) {
    %c0_i32 = arith.constant 0 : i32
    %c0_i32_0 = arith.constant 0 : i32
    return %arg0, %c0_i32 : i32, i32
  }
}

</mosaic_0001>

<bundles_post_ra>
// kernel: residual_temporal_block_forward.1
= control target key start
LH: loop header
LB: loop body
LE: loop exit
PB: predicated region body
PF: predicated region fallthrough
CT: control target
= control target key end

     0   :  { %s3150_s0 = inlined_call_operand.vmem [shape: f32[256,8], index: 0, kind: input, shape index: {}]   ;;  %s3151_s1 = inlined_call_operand.vmem [shape: f32[40,32], index: 1, kind: input, shape index: {}]   ;;  %s3152_s2 = inlined_call_operand.vmem [shape: f32[3,32], index: 2, kind: input, shape index: {}]   ;;  %s3153_s3 = inlined_call_operand.vmem [shape: f32[96,32], index: 3, kind: input, shape index: {}]   ;;  %s3154_s4 = inlined_call_operand.vmem [shape: f32[3,32], index: 4, kind: input, shape index: {}]   ;;  %s3155_s5 = inlined_call_operand.vmem [shape: f32[32,8], index: 5, kind: input, shape index: {}]   ;;  %s3156_s6 = inlined_call_operand.vmem [shape: f32[8,32], index: 6, kind: input, shape index: {}]   ;;  %s3157_s7 = inlined_call_operand.vmem [shape: f32[4,64], index: 7, kind: input, shape index: {}]   ;;  %s3158_s8 = inlined_call_operand.vmem [shape: f32[64,4], index: 8, kind: input, shape index: {}]   ;;  %s3159_s9 = inlined_call_operand.vmem [shape: f32[4,32], index: 9, kind: input, shape index: {}]   ;;  %s3160_s10 = inlined_call_operand.vmem [shape: f32[32,4], index: 10, kind: input, shape index: {}]   ;;  %s3161_s11 = inlined_call_operand.hbm [shape: f32[64,32], index: 11, kind: output, shape index: {}]  }
   0x1   :  { %3163 = sst [smem:[#allocation9_spill]] %s3150_s0 }
   0x2   :  { %16 = vsyncpa [#allocation7], 0 }
   0x3   :  { %18 = vsyncpa [#allocation7 + $0x1], 0  ;;  %s2366_s17 = smov 0   ;;  %s2368_s18 = smov 0  }
   0x4   :  { %s2370_s19 = smov 0   ;;  %s2372_s20 = smov 0  }
   0x5 LB: > { %s2387_s21 = sadd.s32 4294967295, %s2297_s20   ;;  %s2042_s22 = sadd.s32 4294967294, %s2297_s20   ;;  %s2297_s20 = sphi %s2372_s20, %s3171_s20   ;;  %s2293_s19 = sphi %s2370_s19, %s3170_s19   ;;  %s2289_s18 = sphi %s2368_s18, %s3169_s18   ;;  %s2285_s17 = sphi %s2366_s17, %s3168_s17  }
   0x6   : > { %s2391_s23 = sadd.s32 1, %s2297_s20   ;;  %s267_s24 = sadd.s32 1, %s2293_s19 }
   0x7   : > { %s264_s25 = ssub.s32 %s2297_s20, %s2391_s23  ;;  %p277_p0 = scmp.ne.s32.totalorder %s2293_s19, %s2289_s18 }
   0x8   : > { %p265_p1 = scmp.eq.s32.totalorder %s264_s25, 0  ;;  %p278_p2 = scmp.eq.s32.totalorder %s2387_s21, 1 }
   0x9   : > { %p283_p3 = scmp.ne.s32.totalorder %s2289_s18, %s2285_s17  ;;  %p284_p4 = scmp.eq.s32.totalorder %s2042_s22, 1 }
   0xa   : > { %s2402_s26 = scalar_select %p265_p1, %s2293_s19, %s267_s24  }
   0xb   : > { %p2404_p5 = por %p278_p2, %p277_p0  ;;  %p2408_p6 = por %p284_p4, %p283_p3 }
   0xc   : > { %p2045_p7 = scmp.ge.s32.totalorder %s2297_s20, 1  ;;  %p341_p8 = scmp.lt.s32.totalorder %s2297_s20, 3 }
   0xe   : > { %p342_p9 = pnand %p2045_p7, %p341_p8 }
   0xf   : > { %s2047_s29 = sshll.u32 (!%p342_p9), %s2387_s21, 4  ;;  %s3166_s0 = sld [smem:[#allocation9_spill]] (!%p342_p9) }
  0x10   : > { %345 = sbr.rel (%p342_p9) target bundleno = 3048 (0xbe8), region = 64  ;;  %p382_p10 = scmp.lt.s32.totalorder (!%p342_p9), %s2047_s29, 31 }
  0x11   : > { %s3162_s15 = smov (!%p342_p9), 8   ;;  %s2301_s16 = smov (!%p342_p9), 24  }
  0x12   : > { %s2302_s22 = smov (!%p342_p9), 16   ;;  %s2303_s24 = smov (!%p342_p9), 32  }
  0x13   : > { %s2304_s13 = smov (!%p342_p9), 64   ;;  %s2255_s25 = scalar_lea.hbm (!%p342_p9), %s3161_s11, 64 }
  0x15   : > { %vm388_vm0 = vcmask 64512   ;;  %v2299_v0 = vmov 0.0   ;;  %s3173_s29 = smov (!%p382_p10, %s2047_s29), 31  ;;  %v689_v51 = vld [vmem:[%s3151_s1 + $0x20] sm:$0xff]  ;;  %vm443_vm1 = vcmask 130112   ;;  %v688_v53 = vld [vmem:[%s3151_s1 + $0x18] sm:$0xff] }
  0x16   : > { %389 = vst.msk [vmem:[#allocation2] sm:$0xff] %vm388_vm0, %v2299_v0  ;;  %s2048_s30 = sshll.u32 %s3173_s29, 3  ;;  %728 = vmatpush.msra.mxu0 %v689_v51  ;;  %v687_v54 = vld [vmem:[%s3151_s1 + $0x10] sm:$0xff]  ;;  %v686_v55 = vld [vmem:[%s3151_s1 + $0x8] sm:$0xff]  ;;  %v685_v56 = vld [vmem:[%s3151_s1] sm:$0xff]  ;;  %vm458_vm2 = vcmask 195712  }
  0x17   : > { %398 = vst.msk [vmem:[#allocation2 + $0x28] sm:$0xff] %vm388_vm0, %v2299_v0  ;;  %s2426_s14 = scalar_lea.vmem %s3166_s0, %s2048_s30  ;;  %vm473_vm3 = vcmask 261312   ;;  %vm488_vm4 = vcmask 326912   ;;  %vm692_vm5 = vcmask 326656   ;;  %vm761_vm6 = vcmask 523264  }
  0x18   : > { %407 = vst.msk [vmem:[#allocation2 + $0x50] sm:$0xff] %vm388_vm0, %v2299_v0  ;;  %v390_v1 = vld [vmem:[%s2426_s14] sm:$0xff]  ;;  %v391_v2 = vld [vmem:[%s2426_s14 + $0x8] sm:$0xff]  ;;  %v392_v3 = vld [vmem:[%s2426_s14 + $0x10] sm:$0xff]  ;;  %729 = vmatpush.msra.mxu0 %v688_v53  ;;  %vm789_vm7 = vcmask 261120   ;;  %vm847_vm8 = vcmask 1043456  }
  0x19   : > { %416 = vst.msk [vmem:[#allocation2 + $0x78] sm:$0xff] %vm388_vm0, %v2299_v0  ;;  %v393_v4 = vld [vmem:[%s2426_s14 + $0x18] sm:$0xff]  ;;  %v399_v5 = vld [vmem:[%s2426_s14 + $0x20] sm:$0xff]  ;;  %v400_v6 = vld [vmem:[%s2426_s14 + $0x28] sm:$0xff]  ;;  %vm822_vm9 = vcmask 31744  }
  0x1a   : > { %394 = vst.msk [vmem:[#allocation2 + $0x8] sm:$0xff] %vm388_vm0, %v390_v1  ;;  %v401_v7 = vld [vmem:[%s2426_s14 + $0x30] sm:$0xff]  ;;  %v402_v8 = vld [vmem:[%s2426_s14 + $0x38] sm:$0xff]  ;;  %v408_v11 = vld [vmem:[%s2426_s14 + $0x40] sm:$0xff]  ;;  %730 = vmatpush.msra.mxu0 %v687_v54 }
  0x1b   : > { %395 = vst.msk [vmem:[#allocation2 + $0x10] sm:$0xff] %vm388_vm0, %v391_v2  ;;  %v409_v12 = vld [vmem:[%s2426_s14 + $0x48] sm:$0xff]  ;;  %v410_v20 = vld [vmem:[%s2426_s14 + $0x50] sm:$0xff]  ;;  %v411_v21 = vld [vmem:[%s2426_s14 + $0x58] sm:$0xff] }
  0x1c   : > { %396 = vst.msk [vmem:[#allocation2 + $0x18] sm:$0xff] %vm388_vm0, %v392_v3  ;;  %v417_v25 = vld [vmem:[%s2426_s14 + $0x60] sm:$0xff]  ;;  %v418_v26 = vld [vmem:[%s2426_s14 + $0x68] sm:$0xff]  ;;  %v419_v30 = vld [vmem:[%s2426_s14 + $0x70] sm:$0xff]  ;;  %731 = vmatpush.msra.mxu0 %v686_v55 }
  0x1d   : > { %397 = vst.msk [vmem:[#allocation2 + $0x20] sm:$0xff] %vm388_vm0, %v393_v4  ;;  %v420_v31 = vld [vmem:[%s2426_s14 + $0x78] sm:$0xff] }
  0x1e   : > { %403 = vst.msk [vmem:[#allocation2 + $0x30] sm:$0xff] %vm388_vm0, %v399_v5  ;;  %732 = vmatpush.msra.mxu0 %v685_v56 }
  0x1f   : > { %404 = vst.msk [vmem:[#allocation2 + $0x38] sm:$0xff] %vm388_vm0, %v400_v6 }
  0x20   : > { %405 = vst.msk [vmem:[#allocation2 + $0x40] sm:$0xff] %vm388_vm0, %v401_v7 }
  0x21   : > { %406 = vst.msk [vmem:[#allocation2 + $0x48] sm:$0xff] %vm388_vm0, %v402_v8 }
  0x22   : > { %v432_v9 = vld [vmem:[#allocation2 + $0x5] ss:$2 sm:$0xff]  ;;  %412 = vst.msk [vmem:[#allocation2 + $0x58] sm:$0xff] %vm388_vm0, %v408_v11  ;;  %v447_v14 = vld [vmem:[#allocation2 + $0x6] ss:$2 sm:$0xff] }
  0x23   : > { %v462_v10 = vld [vmem:[#allocation2 + $0x7] ss:$2 sm:$0xff]  ;;  %437 = vrot.lane.b32.xlu0 %v432_v9, %s3162_s15  ;;  %413 = vst.msk [vmem:[#allocation2 + $0x60] sm:$0xff] %vm388_vm0, %v409_v12  ;;  %v477_v15 = vld [vmem:[#allocation2 + $0x8] ss:$2 sm:$0xff] }
  0x24   : > { %467 = vrot.lane.b32.xlu1 %v462_v10, %s2301_s16  ;;  %v434_v13 = vld [vmem:[#allocation2 + $0x15] ss:$2 sm:$0xff]  ;;  %v449_v16 = vld [vmem:[#allocation2 + $0x16] ss:$2 sm:$0xff]  ;;  %414 = vst.msk [vmem:[#allocation2 + $0x68] sm:$0xff] %vm388_vm0, %v410_v20 }
  0x25   : > { %439 = vrot.lane.b32.xlu2 %v434_v13, %s3162_s15  ;;  %v464_v17 = vld [vmem:[#allocation2 + $0x17] ss:$2 sm:$0xff]  ;;  %v479_v18 = vld [vmem:[#allocation2 + $0x18] ss:$2 sm:$0xff]  ;;  %415 = vst.msk [vmem:[#allocation2 + $0x70] sm:$0xff] %vm388_vm0, %v411_v21 }
  0x26   : > { %v498_v19 = vld [vmem:[#allocation2 + $0x2d] ss:$2 sm:$0xff]  ;;  %v512_v22 = vld [vmem:[#allocation2 + $0x2e] ss:$2 sm:$0xff]  ;;  %421 = vst.msk [vmem:[#allocation2 + $0x80] sm:$0xff] %vm388_vm0, %v417_v25 }
  0x27   : > { %v526_v23 = vld [vmem:[#allocation2 + $0x2f] ss:$2 sm:$0xff]  ;;  %v540_v24 = vld [vmem:[#allocation2 + $0x30] ss:$2 sm:$0xff]  ;;  %422 = vst.msk [vmem:[#allocation2 + $0x88] sm:$0xff] %vm388_vm0, %v418_v26 }
  0x28   : > { %v500_v27 = vld [vmem:[#allocation2 + $0x3d] ss:$2 sm:$0xff]  ;;  %v514_v28 = vld [vmem:[#allocation2 + $0x3e] ss:$2 sm:$0xff]  ;;  %423 = vst.msk [vmem:[#allocation2 + $0x90] sm:$0xff] %vm388_vm0, %v419_v30 }
  0x29   : > { %v528_v29 = vld [vmem:[#allocation2 + $0x3f] ss:$2 sm:$0xff]  ;;  %424 = vst.msk [vmem:[#allocation2 + $0x98] sm:$0xff] %vm388_vm0, %v420_v31  ;;  %v542_v32 = vld [vmem:[#allocation2 + $0x40] ss:$2 sm:$0xff] }
  0x2a   : > { %v560_v33 = vld [vmem:[#allocation2 + $0x55] ss:$2 sm:$0xff]  ;;  %v574_v34 = vld [vmem:[#allocation2 + $0x56] ss:$2 sm:$0xff]  ;;  %1404 = vst.msk [vmem:[#allocation4] sm:$0xff] %vm789_vm7, %v2299_v0 }
  0x2b   : > { %452 = vrot.lane.b32.xlu0 %v447_v14, %s2302_s22  ;;  %v588_v35 = vld [vmem:[#allocation2 + $0x57] ss:$2 sm:$0xff]  ;;  %v602_v36 = vld [vmem:[#allocation2 + $0x58] ss:$2 sm:$0xff]  ;;  %1407 = vst.msk [vmem:[#allocation4 + $0x18] sm:$0xff] %vm789_vm7, %v2299_v0 }
  0x2c   : > { %482 = vrot.lane.b32.xlu1 %v477_v15, %s2303_s24  ;;  %v562_v37 = vld [vmem:[#allocation2 + $0x65] ss:$2 sm:$0xff]  ;;  %v576_v38 = vld [vmem:[#allocation2 + $0x66] ss:$2 sm:$0xff]  ;;  %1410 = vst.msk [vmem:[#allocation4 + $0x30] sm:$0xff] %vm789_vm7, %v2299_v0 }
  0x2d   : > { %454 = vrot.lane.b32.xlu2 %v449_v16, %s2302_s22  ;;  %v590_v39 = vld [vmem:[#allocation2 + $0x67] ss:$2 sm:$0xff]  ;;  %v604_v40 = vld [vmem:[#allocation2 + $0x68] ss:$2 sm:$0xff]  ;;  %1413 = vst.msk [vmem:[#allocation4 + $0x48] sm:$0xff] %vm789_vm7, %v2299_v0 }
  0x2e   : > { %v622_v41 = vld [vmem:[#allocation2 + $0x7d] ss:$2 sm:$0xff]  ;;  %v636_v42 = vld [vmem:[#allocation2 + $0x7e] ss:$2 sm:$0xff] }
  0x2f   : > { %v650_v43 = vld [vmem:[#allocation2 + $0x7f] ss:$2 sm:$0xff]  ;;  %v664_v44 = vld [vmem:[#allocation2 + $0x80] ss:$2 sm:$0xff] }
  0x30   : > { %v624_v45 = vld [vmem:[#allocation2 + $0x8d] ss:$2 sm:$0xff]  ;;  %v638_v46 = vld [vmem:[#allocation2 + $0x8e] ss:$2 sm:$0xff] }
  0x31   : > { %v652_v47 = vld [vmem:[#allocation2 + $0x8f] ss:$2 sm:$0xff]  ;;  %v666_v48 = vld [vmem:[#allocation2 + $0x90] ss:$2 sm:$0xff] }
  0x32   : > { %v426_v49 = vld [vmem:[#allocation2 + $0x4] ss:$2 sm:$0xff]  ;;  %v428_v50 = vld [vmem:[#allocation2 + $0x14] ss:$2 sm:$0xff] }
  0x33   : > { %469 = vrot.lane.b32.xlu0 %v464_v17, %s2301_s16  ;;  %429 = vst.msk [vmem:[#allocation3] sm:$0xff] %vm388_vm0, %v426_v49  ;;  %v492_v58 = vld [vmem:[#allocation2 + $0x2c] ss:$2 sm:$0xff]  ;;  %v494_v60 = vld [vmem:[#allocation2 + $0x3c] ss:$2 sm:$0xff] }
  0x34   : > { %484 = vrot.lane.b32.xlu1 %v479_v18, %s2303_s24  ;;  %430 = vst.msk [vmem:[#allocation3 + $0x8] sm:$0xff] %vm388_vm0, %v428_v50  ;;  %v554_v3 = vld [vmem:[#allocation2 + $0x54] ss:$2 sm:$0xff]  ;;  %v556_v9 = vld [vmem:[#allocation2 + $0x64] ss:$2 sm:$0xff] }
  0x35   : > { %503 = vrot.lane.b32.xlu2 %v498_v19, %s3162_s15  ;;  %495 = vst.msk [vmem:[#allocation3 + $0x10] sm:$0xff] %vm388_vm0, %v492_v58  ;;  %v616_v14 = vld [vmem:[#allocation2 + $0x7c] ss:$2 sm:$0xff]  ;;  %v618_v20 = vld [vmem:[#allocation2 + $0x8c] ss:$2 sm:$0xff] }
  0x36   : > { %496 = vst.msk [vmem:[#allocation3 + $0x18] sm:$0xff] %vm388_vm0, %v494_v60  ;;  %v2173_v49 = vld [vmem:[%s3152_s2] ss:$0 sm:$0xff]  ;;  %v2637_v0 = vld [vmem:[%s3158_s8 + $0x8] sm:$0xff] }
  0x37   : > { %557 = vst.msk [vmem:[#allocation3 + $0x20] sm:$0xff] %vm388_vm0, %v554_v3  ;;  %v2613_v60 = vld [vmem:[%s3155_s5] sm:$0xff]  ;;  %v2651_v3 = vld [vmem:[%s3158_s8 + $0x18] sm:$0xff] }
  0x38   : > { %558 = vst.msk [vmem:[#allocation3 + $0x28] sm:$0xff] %vm388_vm0, %v556_v9 }
  0x39   : > { %619 = vst.msk [vmem:[#allocation3 + $0x30] sm:$0xff] %vm388_vm0, %v616_v14 }
  0x3a   : > { %620 = vst.msk [vmem:[#allocation3 + $0x38] sm:$0xff] %vm388_vm0, %v618_v20 }
  0x3b   : > { %517 = vrot.lane.b32.xlu0 %v512_v22, %s2302_s22 }
  0x3c   : > { %531 = vrot.lane.b32.xlu1 %v526_v23, %s2301_s16 }
  0x3d   : > { %545 = vrot.lane.b32.xlu2 %v540_v24, %s2303_s24 }
  0x43   : > { %505 = vrot.lane.b32.xlu0 %v500_v27, %s3162_s15 }
  0x44   : > { %519 = vrot.lane.b32.xlu1 %v514_v28, %s2302_s22 }
  0x45   : > { %533 = vrot.lane.b32.xlu2 %v528_v29, %s2301_s16 }
  0x4b   : > { %547 = vrot.lane.b32.xlu0 %v542_v32, %s2303_s24 }
  0x4c   : > { %565 = vrot.lane.b32.xlu1 %v560_v33, %s3162_s15 }
  0x4d   : > { %579 = vrot.lane.b32.xlu2 %v574_v34, %s2302_s22 }
  0x53   : > { %593 = vrot.lane.b32.xlu0 %v588_v35, %s2301_s16 }
  0x54   : > { %607 = vrot.lane.b32.xlu1 %v602_v36, %s2303_s24 }
  0x55   : > { %567 = vrot.lane.b32.xlu2 %v562_v37, %s3162_s15 }
  0x5b   : > { %581 = vrot.lane.b32.xlu0 %v576_v38, %s2302_s22 }
  0x5c   : > { %595 = vrot.lane.b32.xlu1 %v590_v39, %s2301_s16 }
  0x5d   : > { %609 = vrot.lane.b32.xlu2 %v604_v40, %s2303_s24 }
  0x63   : > { %627 = vrot.lane.b32.xlu0 %v622_v41, %s3162_s15 }
  0x64   : > { %641 = vrot.lane.b32.xlu1 %v636_v42, %s2302_s22 }
  0x65   : > { %655 = vrot.lane.b32.xlu2 %v650_v43, %s2301_s16 }
  0x6b   : > { %669 = vrot.lane.b32.xlu0 %v664_v44, %s2303_s24 }
  0x6c   : > { %629 = vrot.lane.b32.xlu1 %v624_v45, %s3162_s15  ;;  %v2558_v45 = vld [vmem:[%s3155_s5 + $0x18] sm:$0xff]  ;;  %s378_s15 = sand.u32 1, %s2289_s18  }
  0x6d   : > { %643 = vrot.lane.b32.xlu2 %v638_v46, %s2302_s22  ;;  %v2563_v46 = vld [vmem:[%s3155_s5 + $0x10] sm:$0xff]  ;;  %805 = vmatpush.msra.mxu2 %v2558_v45  ;;  %s1965_s12 = scalar_lea.sflag [#allocation7], %s378_s15 }
  0x6f   : > { %806 = vmatpush.msra.mxu2 %v2563_v46 }
  0x73   : > { %657 = vrot.lane.b32.xlu0 %v652_v47, %s2301_s16  ;;  %v2569_v47 = vld [vmem:[%s3155_s5 + $0x8] sm:$0xff]  ;;  %s2126_s16 = sshll.u32 %s2387_s21, 5 }
  0x74   : > { %671 = vrot.lane.b32.xlu1 %v666_v48, %s2303_s24  ;;  %807 = vmatpush.msra.mxu2 %v2569_v47  ;;  %s1976_s29 = scalar_lea.hbm %s3161_s11, %s2126_s16 }
  0x75   : > { %s1979_s21 = sshll.u32 %s1976_s29, 4  ;;  %s1980_s21 = int_to_ptr.hbm [resolvable:$true] %s1979_s21 }
  0x76   : > { %808 = vmatpush.msra.mxu2 %v2613_v60 }
  0x7f   : > { %v440_v52 = vpop.permute.xlu2 %439 }
  0x80   : > { %445 = vst.msk [vmem:[#allocation3 + $0x8] sm:$0xff] %vm443_vm1, %v440_v52 }
  0x87   : > { %v455_v57 = vpop.permute.xlu2 %454 }
  0x88   : > { %460 = vst.msk [vmem:[#allocation3 + $0x8] sm:$0xff] %vm458_vm2, %v455_v57 }
  0x8f   : > { %v504_v59 = vpop.permute.xlu2 %503 }
  0x90   : > { %509 = vst.msk [vmem:[#allocation3 + $0x10] sm:$0xff] %vm443_vm1, %v504_v59  ;;  %v2602_v59 = vld [vmem:[%s3157_s7] sm:$0xf] }
  0x95   : > { %v438_v61 = vpop.permute.xlu0 %437 }
  0x96   : > { %v468_v62 = vpop.permute.xlu1 %467  ;;  %444 = vst.msk [vmem:[#allocation3] sm:$0xff] %vm443_vm1, %v438_v61 }
  0x97   : > { %v546_v63 = vpop.permute.xlu2 %545 }
  0x9d   : > { %v453_v1 = vpop.permute.xlu0 %452 }
  0x9e   : > { %v483_v2 = vpop.permute.xlu1 %482  ;;  %459 = vst.msk [vmem:[#allocation3] sm:$0xff] %vm458_vm2, %v453_v1  ;;  %v2629_v1 = vld [vmem:[%s3158_s8] sm:$0xff] }
  0x9f   : > { %474 = vst.msk [vmem:[#allocation3] sm:$0xff] %vm473_vm3, %v468_v62  ;;  %v534_v4 = vpop.permute.xlu2 %533 }
  0xa0   : > { %489 = vst.msk [vmem:[#allocation3] sm:$0xff] %vm488_vm4, %v483_v2  ;;  %v2644_v2 = vld [vmem:[%s3158_s8 + $0x10] sm:$0xff] }
  0xa5   : > { %v470_v5 = vpop.permute.xlu0 %469 }
  0xa6   : > { %v485_v6 = vpop.permute.xlu1 %484  ;;  %475 = vst.msk [vmem:[#allocation3 + $0x8] sm:$0xff] %vm473_vm3, %v470_v5  ;;  %v2665_v5 = vld [vmem:[%s3158_s8 + $0x28] sm:$0xff] }
  0xa7   : > { %490 = vst.msk [vmem:[#allocation3 + $0x8] sm:$0xff] %vm488_vm4, %v485_v6  ;;  %v677_v7 = vld [vmem:[#allocation3] sm:$0xff]  ;;  %v580_v8 = vpop.permute.xlu2 %579  ;;  %v2672_v6 = vld [vmem:[%s3158_s8 + $0x30] sm:$0xff] }
  0xa8   : > { %2049 = vmatmul.msk.f32.vlgmr.msra.gmra.mxu0 %vm692_vm5, %v677_v7  ;;  %v2679_v7 = vld [vmem:[%s3158_s8 + $0x38] sm:$0xff] }
  0xad   : > { %v518_v10 = vpop.permute.xlu0 %517 }
  0xae   : > { %v532_v11 = vpop.permute.xlu1 %531  ;;  %523 = vst.msk [vmem:[#allocation3 + $0x10] sm:$0xff] %vm458_vm2, %v518_v10  ;;  %v678_v12 = vld [vmem:[#allocation3 + $0x8] sm:$0xff] }
  0xaf   : > { %537 = vst.msk [vmem:[#allocation3 + $0x10] sm:$0xff] %vm473_vm3, %v532_v11  ;;  %v568_v13 = vpop.permute.xlu2 %567 }
  0xb0   : > { %2050 = vmatmul.msk.f32.gmra.mxu0 %vm692_vm5, %v678_v12  ;;  %551 = vst.msk [vmem:[#allocation3 + $0x10] sm:$0xff] %vm488_vm4, %v546_v63 }
  0xb1   : > { %572 = vst.msk [vmem:[#allocation3 + $0x28] sm:$0xff] %vm443_vm1, %v568_v13 }
  0xb5   : > { %v506_v15 = vpop.permute.xlu0 %505 }
  0xb6   : > { %v520_v16 = vpop.permute.xlu1 %519  ;;  %510 = vst.msk [vmem:[#allocation3 + $0x18] sm:$0xff] %vm443_vm1, %v506_v15 }
  0xb7   : > { %524 = vst.msk [vmem:[#allocation3 + $0x18] sm:$0xff] %vm458_vm2, %v520_v16  ;;  %v679_v17 = vld [vmem:[#allocation3 + $0x10] sm:$0xff]  ;;  %v610_v24 = vpop.permute.xlu2 %609 }
  0xb8   : > { %538 = vst.msk [vmem:[#allocation3 + $0x18] sm:$0xff] %vm473_vm3, %v534_v4  ;;  %2051 = vmatmul.msk.f32.gmra.mxu0 %vm692_vm5, %v679_v17  ;;  %v2658_v4 = vld [vmem:[%s3158_s8 + $0x20] sm:$0xff] }
  0xbd   : > { %v548_v18 = vpop.permute.xlu0 %547 }
  0xbe   : > { %v566_v19 = vpop.permute.xlu1 %565  ;;  %552 = vst.msk [vmem:[#allocation3 + $0x18] sm:$0xff] %vm488_vm4, %v548_v18 }
  0xbf   : > { %571 = vst.msk [vmem:[#allocation3 + $0x20] sm:$0xff] %vm443_vm1, %v566_v19  ;;  %v656_v28 = vpop.permute.xlu2 %655 }
  0xc0   : > { %585 = vst.msk [vmem:[#allocation3 + $0x20] sm:$0xff] %vm458_vm2, %v580_v8  ;;  %v2686_v8 = vld [vmem:[%s3156_s6] sm:$0xff] }
  0xc1   : > { %932 = vmatpush.msrb.mxu2 %v2686_v8 }
  0xc5   : > { %v594_v21 = vpop.permute.xlu0 %593  ;;  %v680_v23 = vld [vmem:[#allocation3 + $0x18] sm:$0xff] }
  0xc6   : > { %v608_v22 = vpop.permute.xlu1 %607  ;;  %599 = vst.msk [vmem:[#allocation3 + $0x20] sm:$0xff] %vm473_vm3, %v594_v21  ;;  %2052 = vmatmul.msk.f32.gmra.mxu0 %vm692_vm5, %v680_v23 }
  0xc7   : > { %613 = vst.msk [vmem:[#allocation3 + $0x20] sm:$0xff] %vm488_vm4, %v608_v22  ;;  %v644_v32 = vpop.permute.xlu2 %643 }
  0xcd   : > { %v582_v25 = vpop.permute.xlu0 %581 }
  0xce   : > { %v596_v26 = vpop.permute.xlu1 %595  ;;  %586 = vst.msk [vmem:[#allocation3 + $0x28] sm:$0xff] %vm458_vm2, %v582_v25  ;;  %v681_v27 = vld [vmem:[#allocation3 + $0x20] sm:$0xff] }
  0xcf   : > { %600 = vst.msk [vmem:[#allocation3 + $0x28] sm:$0xff] %vm473_vm3, %v596_v26  ;;  %2053 = vmatmul.msk.f32.gmra.mxu0 %vm692_vm5, %v681_v27 }
  0xd0   : > { %614 = vst.msk [vmem:[#allocation3 + $0x28] sm:$0xff] %vm488_vm4, %v610_v24 }
  0xd5   : > { %v628_v29 = vpop.permute.xlu0 %627 }
  0xd6   : > { %v642_v30 = vpop.permute.xlu1 %641  ;;  %633 = vst.msk [vmem:[#allocation3 + $0x30] sm:$0xff] %vm443_vm1, %v628_v29 }
  0xd7   : > { %647 = vst.msk [vmem:[#allocation3 + $0x30] sm:$0xff] %vm458_vm2, %v642_v30  ;;  %v682_v31 = vld [vmem:[#allocation3 + $0x28] sm:$0xff] }
  0xd8   : > { %661 = vst.msk [vmem:[#allocation3 + $0x30] sm:$0xff] %vm473_vm3, %v656_v28  ;;  %2054 = vmatmul.msk.f32.gmra.mxu0 %vm692_vm5, %v682_v31 }
  0xdd   : > { %v670_v33 = vpop.permute.xlu0 %669 }
  0xde   : > { %v630_v34 = vpop.permute.xlu1 %629  ;;  %675 = vst.msk [vmem:[#allocation3 + $0x30] sm:$0xff] %vm488_vm4, %v670_v33 }
  0xdf   : > { %634 = vst.msk [vmem:[#allocation3 + $0x38] sm:$0xff] %vm443_vm1, %v630_v34 }
  0xe0   : > { %648 = vst.msk [vmem:[#allocation3 + $0x38] sm:$0xff] %vm458_vm2, %v644_v32 }
  0xe5   : > { %v658_v35 = vpop.permute.xlu0 %657  ;;  %v683_v37 = vld [vmem:[#allocation3 + $0x30] sm:$0xff] }
  0xe6   : > { %v672_v36 = vpop.permute.xlu1 %671  ;;  %662 = vst.msk [vmem:[#allocation3 + $0x38] sm:$0xff] %vm473_vm3, %v658_v35  ;;  %2055 = vmatmul.msk.f32.gmra.mxu0 %vm692_vm5, %v683_v37 }
  0xe7   : > { %676 = vst.msk [vmem:[#allocation3 + $0x38] sm:$0xff] %vm488_vm4, %v672_v36 }
  0xee   : > { %v684_v38 = vld [vmem:[#allocation3 + $0x38] sm:$0xff] }
  0xef   : > { %2056 = vmatmul.msk.f32.gmra.mxu0 %vm692_vm5, %v684_v38 }
 0x125   : > { %v734_v39 = vpop.f32.mrf.mxu0 }
 0x126   : > { %v2596_v58 = vadd.f32 %v2173_v49, %v734_v39 }
 0x12d   : > { %v737_v40 = vpop.f32.mrf.mxu0 }
 0x12e   : > { %v2593_v57 = vadd.f32 %v2173_v49, %v737_v40 }
 0x135   : > { %v740_v41 = vpop.f32.mrf.mxu0 }
 0x136   : > { %v2590_v56 = vadd.f32 %v2173_v49, %v740_v41 }
 0x143   : > { %v743_v42 = vpop.f32.mrf.mxu0 }
 0x144   : > { %v2587_v55 = vadd.f32 %v2173_v49, %v743_v42 }
 0x14c   : > { %v746_v43 = vpop.f32.mrf.mxu0 }
 0x14d   : > { %v2584_v54 = vadd.f32 %v2173_v49, %v746_v43 }
 0x155   : > { %v749_v44 = vpop.f32.mrf.mxu0 }
 0x156   : > { %v2581_v53 = vadd.f32 %v2173_v49, %v749_v44 }
 0x163   : > { %v752_v48 = vpop.f32.mrf.mxu0 }
 0x164   : > { %v2578_v52 = vadd.f32 %v2173_v49, %v752_v48 }
 0x16c   : > { %v755_v50 = vpop.f32.mrf.mxu0 }
 0x16d   : > { %v2576_v51 = vadd.f32 %v2173_v49, %v755_v50 }
 0x16f   : > { %773 = vmatpush.msra.mxu1 %v2576_v51 }
 0x171   : > { %774 = vmatpush.msra.mxu1 %v2578_v52 }
 0x173   : > { %775 = vmatpush.msra.mxu1 %v2581_v53 }
 0x175   : > { %776 = vmatpush.msra.mxu1 %v2584_v54 }
 0x177   : > { %777 = vmatpush.msra.mxu1 %v2587_v55 }
 0x179   : > { %778 = vmatpush.msra.mxu1 %v2590_v56 }
 0x17b   : > { %779 = vmatpush.msra.mxu1 %v2593_v57 }
 0x17d   : > { %780 = vmatpush.msra.mxu1 %v2596_v58 }
 0x17e   : > { %2057 = vmatmul.msk.f32.vlgmr.msra.gmra.mxu1 %vm761_vm6, %v2602_v59 }
 0x17f   : > { %1009 = vmatpush.msrb.mxu1 %v2558_v45 }
 0x181   : > { %1010 = vmatpush.msrb.mxu1 %v2563_v46 }
 0x183   : > { %1011 = vmatpush.msrb.mxu1 %v2569_v47 }
 0x185   : > { %1012 = vmatpush.msrb.mxu1 %v2613_v60 }
 0x1fb   : > { %v782_v61 = vpop.f32.mrf.mxu1 }
 0x1fc   : > { %2058 = vmatmul.msk.f32.vlgmr.msra.gmra.mxu2 %vm789_vm7, %v782_v61 }
 0x27f   : > { %v810_v62 = vpop.f32.mrf.mxu2 }
 0x280   : > { %v821_v63 = vmul.f32 0.015625, %v810_v62 }
 0x282   : > { %2059 = vmatpush.msk.msra.mxu3 %vm847_vm8, %v821_v63  ;;  %v2774_v63 = vld [vmem:[%s3152_s2 + $0x2] ss:$0 sm:$0xff] }
 0x283   : > { %2060 = vmatmul.msk.f32.vlgmr.msra.gmra.mxu3 %vm822_vm9, %v2629_v1 }
 0x28b   : > { %2061 = vmatmul.msk.f32.gmra.mxu3 %vm822_vm9, %v2637_v0 }
 0x293   : > { %2062 = vmatmul.msk.f32.gmra.mxu3 %vm822_vm9, %v2644_v2 }
 0x29b   : > { %2063 = vmatmul.msk.f32.gmra.mxu3 %vm822_vm9, %v2651_v3 }
 0x2a3   : > { %2064 = vmatmul.msk.f32.gmra.mxu3 %vm822_vm9, %v2658_v4 }
 0x2ab   : > { %2065 = vmatmul.msk.f32.gmra.mxu3 %vm822_vm9, %v2665_v5 }
 0x2b3   : > { %2066 = vmatmul.msk.f32.gmra.mxu3 %vm822_vm9, %v2672_v6 }
 0x2bb   : > { %2067 = vmatmul.msk.f32.gmra.mxu3 %vm822_vm9, %v2679_v7 }
 0x306   : > { %v868_v9 = vpop.f32.mrf.mxu3 }
 0x307   : > { %2068 = vmatmul.msk.f32.vlgmr.msrb.gmra.mxu2 %vm388_vm0, %v868_v9 }
 0x30e   : > { %v871_v10 = vpop.f32.mrf.mxu3 }
 0x30f   : > { %2069 = vmatmul.msk.f32.gmra.mxu2 %vm388_vm0, %v871_v10 }
 0x316   : > { %v874_v11 = vpop.f32.mrf.mxu3 }
 0x317   : > { %2070 = vmatmul.msk.f32.gmra.mxu2 %vm388_vm0, %v874_v11 }
 0x31e   : > { %v877_v12 = vpop.f32.mrf.mxu3 }
 0x31f   : > { %2071 = vmatmul.msk.f32.gmra.mxu2 %vm388_vm0, %v877_v12 }
 0x326   : > { %v880_v13 = vpop.f32.mrf.mxu3 }
 0x327   : > { %2072 = vmatmul.msk.f32.gmra.mxu2 %vm388_vm0, %v880_v13 }
 0x32e   : > { %v883_v14 = vpop.f32.mrf.mxu3 }
 0x32f   : > { %2073 = vmatmul.msk.f32.gmra.mxu2 %vm388_vm0, %v883_v14 }
 0x336   : > { %v886_v15 = vpop.f32.mrf.mxu3 }
 0x337   : > { %2074 = vmatmul.msk.f32.gmra.mxu2 %vm388_vm0, %v886_v15 }
 0x33e   : > { %v889_v16 = vpop.f32.mrf.mxu3 }
 0x33f   : > { %2075 = vmatmul.msk.f32.gmra.mxu2 %vm388_vm0, %v889_v16 }
 0x38a   : > { %v934_v17 = vpop.f32.mrf.mxu2 }
 0x38b   : > { %v958_v37 = vsub.f32 %v2596_v58, %v934_v17 }
 0x38d   : > { %v966_v40 = vmul.f32 %v958_v37, %v958_v37 }
 0x392   : > { %v937_v18 = vpop.f32.mrf.mxu2 }
 0x393   : > { %v2724_v35 = vsub.f32 %v2593_v57, %v937_v18 }
 0x395   : > { %v967_v39 = vmul.f32 %v2724_v35, %v2724_v35 }
 0x39a   : > { %v940_v19 = vpop.f32.mrf.mxu2 }
 0x39b   : > { %v2719_v33 = vsub.f32 %v2590_v56, %v940_v19 }
 0x39d   : > { %v968_v38 = vmul.f32 %v2719_v33, %v2719_v33 }
 0x3a2   : > { %v943_v20 = vpop.f32.mrf.mxu2 }
 0x3a3   : > { %v2714_v31 = vsub.f32 %v2587_v55, %v943_v20 }
 0x3a5   : > { %v969_v36 = vmul.f32 %v2714_v31, %v2714_v31 }
 0x3aa   : > { %v946_v21 = vpop.f32.mrf.mxu2 }
 0x3ab   : > { %v2709_v29 = vsub.f32 %v2584_v54, %v946_v21 }
 0x3ad   : > { %v970_v34 = vmul.f32 %v2709_v29, %v2709_v29 }
 0x3b2   : > { %v949_v22 = vpop.f32.mrf.mxu2 }
 0x3b3   : > { %v2704_v27 = vsub.f32 %v2581_v53, %v949_v22 }
 0x3b5   : > { %v971_v32 = vmul.f32 %v2704_v27, %v2704_v27 }
 0x3ba   : > { %v952_v23 = vpop.f32.mrf.mxu2 }
 0x3bb   : > { %v2698_v25 = vsub.f32 %v2578_v52, %v952_v23 }
 0x3bd   : > { %v972_v30 = vmul.f32 %v2698_v25, %v2698_v25 }
 0x3c2   : > { %v955_v24 = vpop.f32.mrf.mxu2 }
 0x3c3   : > { %v2701_v26 = vsub.f32 %v2576_v51, %v955_v24 }
 0x3c5   : > { %v973_v28 = vmul.f32 %v2701_v26, %v2701_v26 }
 0x3c7   : > { %982 = vmatpush.msrb.mxu3 %v973_v28 }
 0x3c9   : > { %983 = vmatpush.msrb.mxu3 %v972_v30 }
 0x3cb   : > { %984 = vmatpush.msrb.mxu3 %v971_v32 }
 0x3cd   : > { %985 = vmatpush.msrb.mxu3 %v970_v34 }
 0x3cf   : > { %986 = vmatpush.msrb.mxu3 %v969_v36 }
 0x3d1   : > { %987 = vmatpush.msrb.mxu3 %v968_v38 }
 0x3d3   : > { %988 = vmatpush.msrb.mxu3 %v967_v39 }
 0x3d5   : > { %989 = vmatpush.msrb.mxu3 %v966_v40 }
 0x3d6   : > { %2076 = vmatmul.msk.f32.vlgmr.msrb.gmra.mxu3 %vm761_vm6, %v2602_v59 }
 0x3d7   : > { %1112 = vmatpush.msra.mxu3 %v2686_v8 }
 0x3d9   : > { %1591 = vmatpush.msrb.mxu3 %v2558_v45 }
 0x3db   : > { %1592 = vmatpush.msrb.mxu3 %v2563_v46 }
 0x3dd   : > { %1593 = vmatpush.msrb.mxu3 %v2569_v47 }
 0x3df   : > { %1594 = vmatpush.msrb.mxu3 %v2613_v60  ;;  %v2769_v60 = vld [vmem:[%s3152_s2 + $0x1] ss:$0 sm:$0xff] }
 0x459   : > { %v991_v41 = vpop.f32.mrf.mxu3 }
 0x45a   : > { %2077 = vmatmul.msk.f32.vlgmr.msrb.gmra.mxu1 %vm789_vm7, %v991_v41 }
 0x4d7   : > { %v1014_v42 = vpop.f32.mrf.mxu1 }
 0x4d8   : > { %v1017_v43 = vmul.f32 0.015625, %v1014_v42 }
 0x4da   : > { %v1018_v44 = vadd.f32 1e-05, %v1017_v43 }
 0x4dc   : > { %2179 = vrsqrt.f32 %v1018_v44  ;;  %vm1025_vm11 = vweird.f32 %v1018_v44 }
 0x4e2   : > { %v2180_v48 = vpop.eup %2179 }
 0x4e3   : > { %v1020_v49 = vmul.f32 %v2180_v48, %v1018_v44  ;;  %vm1026_vm10 = vweird.f32 %v2180_v48 }
 0x4e4   : > { %vm1027_vm12 = vmor %vm1025_vm11, %vm1026_vm10 }
 0x4e5   : > { %v1021_v50 = vmul.f32 %v2180_v48, %v1020_v49 }
 0x4e7   : > { %v1022_v51 = vmul.f32 0.5, %v1021_v50 }
 0x4e9   : > { %v1023_v52 = vsub.f32 1.5, %v1022_v51 }
 0x4eb   : > { %v1024_v45 = vmul.f32 %v2180_v48, %v1023_v52 }
 0x4ed   : > { %v1028_v46 = vsel %vm1027_vm12, %v2180_v48, %v1024_v45 }
 0x4ee   : > { %2078 = vmatpush.msk.msra.mxu1 %vm847_vm8, %v1028_v46 }
 0x4ef   : > { %2079 = vmatmul.msk.f32.vlgmr.msra.gmra.mxu1 %vm822_vm9, %v2629_v1 }
 0x4f7   : > { %2080 = vmatmul.msk.f32.gmra.mxu1 %vm822_vm9, %v2637_v0 }
 0x4ff   : > { %2081 = vmatmul.msk.f32.gmra.mxu1 %vm822_vm9, %v2644_v2 }
 0x507   : > { %2082 = vmatmul.msk.f32.gmra.mxu1 %vm822_vm9, %v2651_v3 }
 0x50f   : > { %2083 = vmatmul.msk.f32.gmra.mxu1 %vm822_vm9, %v2658_v4 }
 0x517   : > { %2084 = vmatmul.msk.f32.gmra.mxu1 %vm822_vm9, %v2665_v5 }
 0x51f   : > { %2085 = vmatmul.msk.f32.gmra.mxu1 %vm822_vm9, %v2672_v6 }
 0x527   : > { %2086 = vmatmul.msk.f32.gmra.mxu1 %vm822_vm9, %v2679_v7 }
 0x56c   : > { %v1049_v47 = vpop.f32.mrf.mxu1 }
 0x56d   : > { %2087 = vmatmul.msk.f32.vlgmr.msra.gmra.mxu3 %vm388_vm0, %v1049_v47 }
 0x574   : > { %v1052_v53 = vpop.f32.mrf.mxu1 }
 0x575   : > { %2088 = vmatmul.msk.f32.gmra.mxu3 %vm388_vm0, %v1052_v53 }
 0x57c   : > { %v1055_v54 = vpop.f32.mrf.mxu1 }
 0x57d   : > { %2089 = vmatmul.msk.f32.gmra.mxu3 %vm388_vm0, %v1055_v54 }
 0x584   : > { %v1058_v55 = vpop.f32.mrf.mxu1 }
 0x585   : > { %2090 = vmatmul.msk.f32.gmra.mxu3 %vm388_vm0, %v1058_v55 }
 0x58c   : > { %v1061_v56 = vpop.f32.mrf.mxu1 }
 0x58d   : > { %2091 = vmatmul.msk.f32.gmra.mxu3 %vm388_vm0, %v1061_v56 }
 0x594   : > { %v1064_v57 = vpop.f32.mrf.mxu1 }
 0x595   : > { %2092 = vmatmul.msk.f32.gmra.mxu3 %vm388_vm0, %v1064_v57 }
 0x59c   : > { %v1067_v58 = vpop.f32.mrf.mxu1 }
 0x59d   : > { %2093 = vmatmul.msk.f32.gmra.mxu3 %vm388_vm0, %v1067_v58 }
 0x5a4   : > { %v1070_v59 = vpop.f32.mrf.mxu1 }
 0x5a5   : > { %2094 = vmatmul.msk.f32.gmra.mxu3 %vm388_vm0, %v1070_v59 }
 0x5f0   : > { %v1114_v61 = vpop.f32.mrf.mxu3 }
 0x5f1   : > { %v1138_v62 = vmul.f32 %v1114_v61, %v958_v37 }
 0x5f3   : > { %v1147_v1 = vmul.f32 %v2769_v60, %v1138_v62 }
 0x5f5   : > { %v2778_v0 = vadd.f32 %v2774_v63, %v1147_v1 }
 0x5f7   : > { %v1164_v2 = vand.u32 2147483647, %v2778_v0  ;;  %vm1196_vm13 = vcmp.ge.f32.partialorder %v2778_v0, 0.0 }
 0x5f8   : > { %v1117_v3 = vpop.f32.mrf.mxu3 }
 0x5f9   : > { %v1172_v4 = vsub.f32 0.0, %v1164_v2  ;;  %v1139_v5 = vmul.f32 %v1117_v3, %v2724_v35 }
 0x5fb   : > { %v1180_v6 = vmul.f32 1.442695, %v1172_v4  ;;  %v1148_v7 = vmul.f32 %v2769_v60, %v1139_v5 }
 0x5fd   : > { %2181 = vpow2.f32 %v1180_v6  ;;  %v2784_v9 = vadd.f32 %v2774_v63, %v1148_v7 }
 0x5ff   : > { %v1165_v10 = vand.u32 2147483647, %v2784_v9  ;;  %vm1197_vm14 = vcmp.ge.f32.partialorder %v2784_v9, 0.0 }
 0x600   : > { %v1120_v11 = vpop.f32.mrf.mxu3 }
 0x601   : > { %v1173_v12 = vsub.f32 0.0, %v1165_v10  ;;  %v1140_v13 = vmul.f32 %v1120_v11, %v2719_v33 }
 0x603   : > { %v2182_v14 = vpop.eup %2181  ;;  %v1182_v15 = vmul.f32 1.442695, %v1173_v12  ;;  %v1149_v16 = vmul.f32 %v2769_v60, %v1140_v13 }
 0x604   : > { %v1204_v17 = vmul.f32 2.0, %v2182_v14  ;;  %v1220_v18 = vadd.f32 2.0, %v2182_v14 }
 0x605   : > { %2183 = vpow2.f32 %v1182_v15  ;;  %v2790_v19 = vadd.f32 %v2774_v63, %v1149_v16 }
 0x606   : > { %v1212_v20 = vadd.f32 1.0, %v1204_v17  ;;  %v1228_v21 = vmul.f32 %v2182_v14, %v1220_v18  ;;  %v1244_v22 = vmul.f32 %v2182_v14, %v1204_v17 }
 0x607   : > { %v1166_v23 = vand.u32 2147483647, %v2790_v19  ;;  %vm1198_vm15 = vcmp.ge.f32.partialorder %v2790_v19, 0.0 }
 0x608   : > { %v1252_v24 = vadd.f32 %v1244_v22, %v1212_v20  ;;  %v1260_v28 = vadd.f32 2.0, %v1228_v21  ;;  %v1123_v30 = vpop.f32.mrf.mxu3  ;;  %v1236_v62 = vsel %vm1196_vm13, %v1212_v20, %v1228_v21 }
 0x609   : > { %v1174_v32 = vsub.f32 0.0, %v1166_v23  ;;  %v1141_v33 = vmul.f32 %v1123_v30, %v2714_v31  ;;  %v1276_v14 = vmul.f32 %v1236_v62, %v2778_v0 }
 0x60a   : > { %v1268_v34 = vsel %vm1196_vm13, %v1252_v24, %v1260_v28 }
 0x60b   : > { %v2184_v35 = vpop.eup %2183  ;;  %2185 = vrcp.f32 %v1268_v34  ;;  %v1184_v38 = vmul.f32 1.442695, %v1174_v32  ;;  %v1150_v39 = vmul.f32 %v2769_v60, %v1141_v33  ;;  %v1293_v55 = vand.u32 2147483647, %v1268_v34 }
 0x60c   : > { %v1205_v36 = vmul.f32 2.0, %v2184_v35  ;;  %v1221_v37 = vadd.f32 2.0, %v2184_v35  ;;  %v1295_v56 = vand.u32 2147483648, %v1268_v34  ;;  %vm1289_vm2 = vweird.f32 %v1268_v34 }
 0x60d   : > { %2187 = vpow2.f32 %v1184_v38  ;;  %v2801_v43 = vadd.f32 %v2774_v63, %v1150_v39  ;;  %vm1294_vm4 = vcmp.eq.f32.partialorder %v1293_v55, 8.507059e+37 }
 0x60e   : > { %v2798_v40 = vadd.f32 1.0, %v1205_v36  ;;  %v1229_v41 = vmul.f32 %v2184_v35, %v1221_v37  ;;  %v1245_v42 = vmul.f32 %v2184_v35, %v1205_v36  ;;  %v1296_v10 = vor.u32 1.1754944e-38, %v1295_v56 }
 0x60f   : > { %v1167_v50 = vand.u32 2147483647, %v2801_v43  ;;  %vm1199_vm12 = vcmp.ge.f32.partialorder %v2801_v43, 0.0 }
 0x610   : > { %v1253_v31 = vadd.f32 %v1245_v42, %v2798_v40  ;;  %v1261_v44 = vadd.f32 2.0, %v1229_v41  ;;  %v1126_v48 = vpop.f32.mrf.mxu3  ;;  %v1237_v33 = vsel %vm1197_vm14, %v2798_v40, %v1229_v41 }
 0x611   : > { %v2186_v49 = vpop.eup %2185  ;;  %v1142_v51 = vmul.f32 %v1126_v48, %v2709_v29  ;;  %v1175_v53 = vsub.f32 0.0, %v1167_v50  ;;  %v1277_v40 = vmul.f32 %v1237_v33, %v2784_v9 }
 0x612   : > { %v1285_v52 = vmul.f32 %v2186_v49, %v1268_v34  ;;  %v2809_v45 = vsel %vm1197_vm14, %v1253_v31, %v1261_v44  ;;  %vm1290_vm1 = vweird.f32 %v2186_v49 }
 0x613   : > { %2189 = vrcp.f32 %v2809_v45  ;;  %v2188_v46 = vpop.eup %2187  ;;  %v1151_v54 = vmul.f32 %v2769_v60, %v1142_v51  ;;  %v1186_v29 = vmul.f32 1.442695, %v1175_v53  ;;  %vm1291_vm3 = vmor %vm1289_vm2, %vm1290_vm1  ;;  %v1310_v24 = vand.u32 2147483648, %v2809_v45 }
 0x614   : > { %v1286_v47 = vsub.f32 1.0, %v1285_v52  ;;  %v1206_v57 = vmul.f32 2.0, %v2188_v46  ;;  %v1222_v58 = vadd.f32 2.0, %v2188_v46  ;;  %v1308_v32 = vand.u32 2147483647, %v2809_v45 }
 0x615   : > { %v2815_v61 = vadd.f32 %v2774_v63, %v1151_v54  ;;  %2191 = vpow2.f32 %v1186_v29  ;;  %vm1304_vm6 = vweird.f32 %v2809_v45  ;;  %v1311_v37 = vor.u32 1.1754944e-38, %v1310_v24 }
 0x616   : > { %v1287_v59 = vmul.f32 %v2186_v49, %v1286_v47  ;;  %v1214_v1 = vadd.f32 1.0, %v1206_v57  ;;  %v1230_v2 = vmul.f32 %v2188_v46, %v1222_v58  ;;  %v1246_v3 = vmul.f32 %v2188_v46, %v1206_v57 }
 0x617   : > { %v1168_v5 = vand.u32 2147483647, %v2815_v61  ;;  %vm1309_vm11 = vcmp.eq.f32.partialorder %v1308_v32, 8.507059e+37  ;;  %vm1200_vm2 = vcmp.ge.f32.partialorder %v2815_v61, 0.0 }
 0x618   : > { %v1288_v4 = vadd.f32 %v2186_v49, %v1287_v59  ;;  %v1129_v6 = vpop.f32.mrf.mxu3  ;;  %v1254_v11 = vadd.f32 %v1246_v3, %v1214_v1  ;;  %v1262_v12 = vadd.f32 2.0, %v1230_v2  ;;  %v1238_v53 = vsel %vm1198_vm15, %v1214_v1, %v1230_v2 }
 0x619   : > { %v2190_v7 = vpop.eup %2189  ;;  %v1143_v13 = vmul.f32 %v1129_v6, %v2704_v27  ;;  %v1176_v20 = vsub.f32 0.0, %v1168_v5  ;;  %v1278_v29 = vmul.f32 %v1238_v53, %v2790_v19 }
 0x61a   : > { %v1292_v15 = vsel %vm1291_vm3, %v2186_v49, %v1288_v4  ;;  %v1300_v16 = vmul.f32 %v2190_v7, %v2809_v45  ;;  %v2825_v18 = vsel %vm1198_vm15, %v1254_v11, %v1262_v12  ;;  %vm1305_vm5 = vweird.f32 %v2190_v7 }
 0x61b   : > { %v1297_v17 = vsel %vm1294_vm4, %v1296_v10, %v1292_v15  ;;  %v1152_v21 = vmul.f32 %v2769_v60, %v1143_v13  ;;  %2193 = vrcp.f32 %v2825_v18  ;;  %v1188_v27 = vmul.f32 1.442695, %v1176_v20  ;;  %v2192_v28 = vpop.eup %2191  ;;  %vm1306_vm10 = vmor %vm1304_vm6, %vm1305_vm5 }
 0x61c   : > { %v1298_v22 = vmul.f32 %v1297_v17, %v1276_v14  ;;  %v1301_v23 = vsub.f32 1.0, %v1300_v16  ;;  %v1207_v34 = vmul.f32 2.0, %v2192_v28  ;;  %v1223_v35 = vadd.f32 2.0, %v2192_v28 }
 0x61d   : > { %v2831_v0 = vadd.f32 %v2774_v63, %v1152_v21  ;;  %2195 = vpow2.f32 %v1188_v27  ;;  %v1325_v56 = vand.u32 2147483648, %v2825_v18  ;;  %v1323_v59 = vand.u32 2147483647, %v2825_v18 }
 0x61e   : > { %1405 = vst.msk [vmem:[#allocation4 + $0x8] sm:$0xff] %vm789_vm7, %v1298_v22  ;;  %v1302_v30 = vmul.f32 %v2190_v7, %v1301_v23  ;;  %v2840_v42 = vadd.f32 1.0, %v1207_v34  ;;  %v2842_v31 = vmul.f32 %v2192_v28, %v1223_v35  ;;  %v1247_v44 = vmul.f32 %v2192_v28, %v1207_v34 }
 0x61f   : > { %v1169_v38 = vand.u32 2147483647, %v2831_v0  ;;  %vm1319_vm14 = vweird.f32 %v2825_v18  ;;  %v1326_v6 = vor.u32 1.1754944e-38, %v1325_v56  ;;  %vm1324_vm1 = vcmp.eq.f32.partialorder %v1323_v59, 8.507059e+37 }
 0x620   : > { %v1303_v36 = vadd.f32 %v2190_v7, %v1302_v30  ;;  %v1132_v39 = vpop.f32.mrf.mxu3  ;;  %v1255_v46 = vadd.f32 %v1247_v44, %v2840_v42  ;;  %v1263_v47 = vadd.f32 2.0, %v2842_v31  ;;  %vm1201_vm6 = vcmp.ge.f32.partialorder %v2831_v0, 0.0 }
 0x621   : > { %v1144_v48 = vmul.f32 %v1132_v39, %v2698_v25  ;;  %v2194_v49 = vpop.eup %2193  ;;  %v1177_v50 = vsub.f32 0.0, %v1169_v38 }
 0x622   : > { %v1307_v41 = vsel %vm1306_vm10, %v2190_v7, %v1303_v36  ;;  %v1315_v52 = vmul.f32 %v2194_v49, %v2825_v18  ;;  %v2857_v57 = vsel %vm1199_vm12, %v1255_v46, %v1263_v47  ;;  %vm1320_vm13 = vweird.f32 %v2194_v49 }
 0x623   : > { %v1312_v51 = vsel %vm1309_vm11, %v1311_v37, %v1307_v41  ;;  %v1190_v54 = vmul.f32 1.442695, %v1177_v50  ;;  %v1153_v9 = vmul.f32 %v2769_v60, %v1144_v48  ;;  %v2196_v55 = vpop.eup %2195  ;;  %2197 = vrcp.f32 %v2857_v57  ;;  %vm1321_vm15 = vmor %vm1319_vm14, %vm1320_vm13 }
 0x624   : > { %v1313_v45 = vmul.f32 %v1312_v51, %v1277_v40  ;;  %v1316_v25 = vsub.f32 1.0, %v1315_v52  ;;  %v1208_v62 = vmul.f32 2.0, %v2196_v55  ;;  %v1224_v1 = vadd.f32 2.0, %v2196_v55 }
 0x625   : > { %2199 = vpow2.f32 %v1190_v54  ;;  %v2864_v4 = vadd.f32 %v2774_v63, %v1153_v9  ;;  %v1338_v34 = vand.u32 2147483647, %v2857_v57  ;;  %v1340_v35 = vand.u32 2147483648, %v2857_v57 }
 0x626   : > { %1406 = vst.msk [vmem:[#allocation4 + $0x10] sm:$0xff] %vm789_vm7, %v1313_v45  ;;  %v1317_v58 = vmul.f32 %v2194_v49, %v1316_v25  ;;  %v2867_v7 = vadd.f32 1.0, %v1208_v62  ;;  %v2869_v10 = vmul.f32 %v2196_v55, %v1224_v1  ;;  %v1248_v11 = vmul.f32 %v2196_v55, %v1208_v62 }
 0x627   : > { %v1170_v12 = vand.u32 2147483647, %v2864_v4  ;;  %vm1334_vm4 = vweird.f32 %v2857_v57  ;;  %v1341_v50 = vor.u32 1.1754944e-38, %v1340_v35  ;;  %vm1339_vm10 = vcmp.eq.f32.partialorder %v1338_v34, 8.507059e+37 }
 0x628   : > { %v1135_v2 = vpop.f32.mrf.mxu3  ;;  %v1318_v3 = vadd.f32 %v2194_v49, %v1317_v58  ;;  %v1256_v15 = vadd.f32 %v1248_v11, %v2867_v7  ;;  %v1264_v16 = vadd.f32 2.0, %v2869_v10  ;;  %v1240_v58 = vsel %vm1200_vm2, %v2867_v7, %v2869_v10 }
 0x629   : > { %v1145_v5 = vmul.f32 %v1135_v2, %v2701_v26  ;;  %v2198_v17 = vpop.eup %2197  ;;  %v1178_v18 = vsub.f32 0.0, %v1170_v12  ;;  %vm1202_vm14 = vcmp.ge.f32.partialorder %v2864_v4, 0.0 }
 0x62a   : > { %v1322_v19 = vsel %vm1321_vm15, %v2194_v49, %v1318_v3  ;;  %v1330_v24 = vmul.f32 %v2198_v17, %v2857_v57  ;;  %vm1335_vm3 = vweird.f32 %v2198_v17 }
 0x62b   : > { %v1154_v13 = vmul.f32 %v2769_v60, %v1145_v5  ;;  %v1327_v14 = vsel %vm1324_vm1, %v1326_v6, %v1322_v19  ;;  %v2200_v23 = vpop.eup %2199  ;;  %v2882_v60 = vsel %vm1200_vm2, %v1256_v15, %v1264_v16  ;;  %v1192_v33 = vmul.f32 1.442695, %v1178_v18  ;;  %vm1336_vm5 = vmor %vm1334_vm4, %vm1335_vm3 }
 0x62c   : > { %v1328_v26 = vmul.f32 %v1327_v14, %v1278_v29  ;;  %2201 = vrcp.f32 %v2882_v60  ;;  %v1331_v28 = vsub.f32 1.0, %v1330_v24  ;;  %v1209_v30 = vmul.f32 2.0, %v2200_v23 }
 0x62d   : > { %v2877_v20 = vadd.f32 %v2774_v63, %v1154_v13  ;;  %v1428_v21 = vld [vmem:[#allocation4 + $0x8] ss:$2 sm:$0xff]  ;;  %v1420_v22 = vld [vmem:[#allocation4 + $0x7] ss:$2 sm:$0xff]  ;;  %v1239_v63 = vsel %vm1199_vm12, %v2840_v42, %v2842_v31  ;;  %v1225_v32 = vadd.f32 2.0, %v2200_v23  ;;  %2203 = vpow2.f32 %v1192_v33 }
 0x62e   : > { %1430 = vrot.lane.b32.xlu0 %v1428_v21, %s2304_s13  ;;  %1422 = vrot.lane.b32.xlu2 %v1420_v22, %s2303_s24  ;;  %v1417_v27 = vld [vmem:[#allocation4 + $0x6] ss:$2 sm:$0xff]  ;;  %1408 = vst.msk [vmem:[#allocation4 + $0x20] sm:$0xff] %vm789_vm7, %v1328_v26  ;;  %v1332_v37 = vmul.f32 %v2198_v17, %v1331_v28  ;;  %v2896_v38 = vadd.f32 1.0, %v1209_v30  ;;  %v1249_v42 = vmul.f32 %v2200_v23, %v1209_v30  ;;  %v1355_v9 = vand.u32 2147483648, %v2882_v60 }
 0x62f   : > { %1418 = vst.msk [vmem:[#allocation5] sm:$0xff] %vm789_vm7, %v1417_v27  ;;  %v1171_v36 = vand.u32 2147483647, %v2877_v20  ;;  %v2898_v39 = vmul.f32 %v2200_v23, %v1225_v32  ;;  %v1279_v41 = vmul.f32 %v1239_v63, %v2801_v43  ;;  %v1353_v43 = vand.u32 2147483647, %v2882_v60 }
 0x630   : > { %v1333_v44 = vadd.f32 %v2198_v17, %v1332_v37  ;;  %v1257_v48 = vadd.f32 %v1249_v42, %v2896_v38  ;;  %vm1349_vm12 = vweird.f32 %v2882_v60  ;;  %v1356_v3 = vor.u32 1.1754944e-38, %v1355_v9 }
 0x631   : > { %v1179_v31 = vsub.f32 0.0, %v1171_v36  ;;  %v1265_v49 = vadd.f32 2.0, %v2898_v39  ;;  %v1280_v6 = vmul.f32 %v1240_v58, %v2815_v61  ;;  %vm1354_vm15 = vcmp.eq.f32.partialorder %v1353_v43, 8.507059e+37 }
 0x632   : > { %v2202_v40 = vpop.eup %2201  ;;  %v1337_v52 = vsel %vm1336_vm5, %v2198_v17, %v1333_v44  ;;  %v1241_v24 = vsel %vm1201_vm6, %v2896_v38, %v2898_v39  ;;  %vm1203_vm5 = vcmp.ge.f32.partialorder %v2877_v20, 0.0 }
 0x633   : > { %v1194_v51 = vmul.f32 1.442695, %v1179_v31  ;;  %v1345_v45 = vmul.f32 %v2202_v40, %v2882_v60  ;;  %v1273_v46 = vsel %vm1201_vm6, %v1257_v48, %v1265_v49  ;;  %v1342_v47 = vsel %vm1339_vm10, %v1341_v50, %v1337_v52  ;;  %v2204_v54 = vpop.eup %2203 }
 0x634   : > { %2205 = vrcp.f32 %v1273_v46  ;;  %v1343_v53 = vmul.f32 %v1342_v47, %v1279_v41  ;;  %vm1350_vm11 = vweird.f32 %v2202_v40  ;;  %v1210_v56 = vmul.f32 2.0, %v2204_v54 }
 0x635   : > { %v1346_v25 = vsub.f32 1.0, %v1345_v45  ;;  %2207 = vpow2.f32 %v1194_v51  ;;  %v1226_v57 = vadd.f32 2.0, %v2204_v54  ;;  %vm1351_vm13 = vmor %vm1349_vm12, %vm1350_vm11  ;;  %v1370_v13 = vand.u32 2147483648, %v1273_v46 }
 0x636   : > { %1409 = vst.msk [vmem:[#allocation4 + $0x28] sm:$0xff] %vm789_vm7, %v1343_v53  ;;  %v1218_v29 = vadd.f32 1.0, %v1210_v56  ;;  %v1250_v1 = vmul.f32 %v2204_v54, %v1210_v56  ;;  %v1368_v23 = vand.u32 2147483647, %v1273_v46  ;;  %vm1364_vm2 = vweird.f32 %v1273_v46 }
 0x637   : > { %v1347_v55 = vmul.f32 %v2202_v40, %v1346_v25  ;;  %v1234_v62 = vmul.f32 %v2204_v54, %v1226_v57  ;;  %v1371_v30 = vor.u32 1.1754944e-38, %v1370_v13  ;;  %v1281_v34 = vmul.f32 %v1241_v24, %v2831_v0  ;;  %v1496_v13 = vld [vmem:[%s3153_s3 + $0x30] sm:$0xff] }
 0x638   : > { %v1258_v7 = vadd.f32 %v1250_v1, %v1218_v29  ;;  %vm1369_vm4 = vcmp.eq.f32.partialorder %v1368_v23, 8.507059e+37 }
 0x639   : > { %v1348_v59 = vadd.f32 %v2202_v40, %v1347_v55  ;;  %v1266_v10 = vadd.f32 2.0, %v1234_v62 }
 0x63a   : > { %v2206_v2 = vpop.eup %2205 }
 0x63b   : > { %v2208_v5 = vpop.eup %2207  ;;  %v1352_v11 = vsel %vm1351_vm13, %v2202_v40, %v1348_v59  ;;  %v1360_v19 = vmul.f32 %v2206_v2, %v1273_v46  ;;  %v1274_v26 = vsel %vm1202_vm14, %v1258_v7, %v1266_v10  ;;  %vm1365_vm1 = vweird.f32 %v2206_v2  ;;  %v1495_v7 = vld [vmem:[%s3153_s3 + $0x28] sm:$0xff]  ;;  %v1494_v10 = vld [vmem:[%s3153_s3 + $0x20] sm:$0xff] }
 0x63c   : > { %v1357_v12 = vsel %vm1354_vm15, %v1356_v3, %v1352_v11  ;;  %v1211_v16 = vmul.f32 2.0, %v2208_v5  ;;  %v1227_v17 = vadd.f32 2.0, %v2208_v5  ;;  %2209 = vrcp.f32 %v1274_v26  ;;  %vm1366_vm3 = vmor %vm1364_vm2, %vm1365_vm1  ;;  %v1499_v11 = vld [vmem:[%s3153_s3 + $0x48] sm:$0xff] }
 0x63d   : > { %v1358_v14 = vmul.f32 %v1357_v12, %v1280_v6  ;;  %v1361_v15 = vsub.f32 1.0, %v1360_v19  ;;  %v1446_v18 = vld [vmem:[#allocation4 + $0x20] ss:$2 sm:$0xff]  ;;  %v1439_v21 = vld [vmem:[#allocation4 + $0x1f] ss:$2 sm:$0xff]  ;;  %v1385_v44 = vand.u32 2147483648, %v1274_v26  ;;  %v1242_v40 = vsel %vm1202_vm14, %v1218_v29, %v1234_v62 }
 0x63e   : > { %v1436_v22 = vld [vmem:[#allocation4 + $0x1e] ss:$2 sm:$0xff]  ;;  %1448 = vrot.lane.b32.xlu2 %v1446_v18, %s2304_s13  ;;  %1441 = vrot.lane.b32.xlu1 %v1439_v21, %s2303_s24  ;;  %v1219_v60 = vadd.f32 1.0, %v1211_v16  ;;  %v1235_v27 = vmul.f32 %v2208_v5, %v1227_v17  ;;  %v1251_v63 = vmul.f32 %v2208_v5, %v1211_v16  ;;  %v1383_v49 = vand.u32 2147483647, %v1274_v26 }
 0x63f   : > { %1411 = vst.msk [vmem:[#allocation4 + $0x38] sm:$0xff] %vm789_vm7, %v1358_v14  ;;  %v1362_v61 = vmul.f32 %v2206_v2, %v1361_v15  ;;  %vm1379_vm10 = vweird.f32 %v1274_v26  ;;  %v1386_v51 = vor.u32 1.1754944e-38, %v1385_v44  ;;  %v1282_v52 = vmul.f32 %v1242_v40, %v2864_v4  ;;  %v1501_v6 = vld [vmem:[%s3153_s3 + $0x58] sm:$0xff]  ;;  %v1498_v19 = vld [vmem:[%s3153_s3 + $0x40] sm:$0xff]  ;;  %v1492_v15 = vld [vmem:[%s3153_s3 + $0x10] sm:$0xff] }
 0x640   : > { %1437 = vst.msk [vmem:[#allocation5 + $0x8] sm:$0xff] %vm789_vm7, %v1436_v22  ;;  %v1259_v32 = vadd.f32 %v1251_v63, %v1219_v60  ;;  %v1267_v33 = vadd.f32 2.0, %v1235_v27  ;;  %vm1384_vm12 = vcmp.eq.f32.partialorder %v1383_v49, 8.507059e+37  ;;  %v1243_v4 = vsel %vm1203_vm5, %v1219_v60, %v1235_v27  ;;  %1521 = vmatpush.msrb.mxu0 %v1501_v6  ;;  %v1497_v12 = vld [vmem:[%s3153_s3 + $0x38] sm:$0xff]  ;;  %v1491_v16 = vld [vmem:[%s3153_s3 + $0x8] sm:$0xff] }
 0x641   : > { %v1363_v28 = vadd.f32 %v2206_v2, %v1362_v61  ;;  %v1283_v59 = vmul.f32 %v1243_v4, %v2877_v20  ;;  %v1500_v20 = vld [vmem:[%s3153_s3 + $0x50] sm:$0xff]  ;;  %v1493_v14 = vld [vmem:[%s3153_s3 + $0x18] sm:$0xff]  ;;  %vm1425_vm2 = vcmask 523520   ;;  %v1600_v40 = vld [vmem:[%s3160_s10 + $0x8] sm:$0xff] }
 0x642   : > { %v1275_v37 = vsel %vm1203_vm5, %v1259_v32, %v1267_v33  ;;  %v2210_v38 = vpop.eup %2209  ;;  %1522 = vmatpush.msrb.mxu0 %v1500_v20 }
 0x643   : > { %v1367_v35 = vsel %vm1366_vm3, %v2206_v2, %v1363_v28  ;;  %2211 = vrcp.f32 %v1275_v37  ;;  %v1375_v42 = vmul.f32 %v2210_v38, %v1274_v26  ;;  %vm1380_vm6 = vweird.f32 %v2210_v38  ;;  %v1490_v26 = vld [vmem:[%s3153_s3] sm:$0xff] }
 0x644   : > { %v1372_v36 = vsel %vm1369_vm4, %v1371_v30, %v1367_v35  ;;  %vm1381_vm11 = vmor %vm1379_vm10, %vm1380_vm6  ;;  %v1400_v54 = vand.u32 2147483648, %v1275_v37  ;;  %v1398_v56 = vand.u32 2147483647, %v1275_v37  ;;  %vm1394_vm14 = vweird.f32 %v1275_v37  ;;  %1523 = vmatpush.msrb.mxu0 %v1499_v11  ;;  %v2176_v35 = vld [vmem:[%s3154_s4] ss:$0 sm:$0xff] }
 0x645   : > { %v1373_v39 = vmul.f32 %v1372_v36, %v1281_v34  ;;  %v1376_v31 = vsub.f32 1.0, %v1375_v42  ;;  %vm1433_vm3 = vcmask 785920   ;;  %vm1504_vm4 = vcmask 785408  }
 0x646   : > { %v1401_v58 = vor.u32 1.1754944e-38, %v1400_v54  ;;  %vm1399_vm1 = vcmp.eq.f32.partialorder %v1398_v56, 8.507059e+37  ;;  %1524 = vmatpush.msrb.mxu0 %v1498_v19 }
 0x647   : > { %1412 = vst.msk [vmem:[#allocation4 + $0x40] sm:$0xff] %vm789_vm7, %v1373_v39  ;;  %v1377_v48 = vmul.f32 %v2210_v38, %v1376_v31  ;;  %v1548_v31 = vld [vmem:[%s3159_s9] sm:$0xf] }
 0x648   : > { %1525 = vmatpush.msrb.mxu0 %v1497_v12 }
 0x649   : > { %v2212_v0 = vpop.eup %2211  ;;  %v1378_v41 = vadd.f32 %v2210_v38, %v1377_v48 }
 0x64a   : > { %v1390_v50 = vmul.f32 %v2212_v0, %v1275_v37  ;;  %vm1395_vm13 = vweird.f32 %v2212_v0  ;;  %1526 = vmatpush.msrb.mxu0 %v1496_v13 }
 0x64b   : > { %v1382_v45 = vsel %vm1381_vm11, %v2210_v38, %v1378_v41  ;;  %vm1396_vm15 = vmor %vm1394_vm14, %vm1395_vm13  ;;  %v1601_v41 = vld [vmem:[%s3160_s10 + $0x10] sm:$0xff] }
 0x64c   : > { %v1391_v46 = vsub.f32 1.0, %v1390_v50  ;;  %v1387_v25 = vsel %vm1384_vm12, %v1386_v51, %v1382_v45  ;;  %1527 = vmatpush.msrb.mxu0 %v1495_v7  ;;  %v1602_v50 = vld [vmem:[%s3160_s10 + $0x18] sm:$0xff] }
 0x64d   : > { %v1388_v9 = vmul.f32 %v1387_v25, %v1282_v52 }
 0x64e   : > { %v1463_v47 = vld [vmem:[#allocation4 + $0x38] ss:$2 sm:$0xff]  ;;  %v1456_v53 = vld [vmem:[#allocation4 + $0x37] ss:$2 sm:$0xff]  ;;  %v1392_v55 = vmul.f32 %v2212_v0, %v1391_v46  ;;  %1528 = vmatpush.msrb.mxu0 %v1494_v10 }
 0x64f   : > { %1465 = vrot.lane.b32.xlu1 %v1463_v47, %s2304_s13  ;;  %1458 = vrot.lane.b32.xlu0 %v1456_v53, %s2303_s24  ;;  %v1453_v43 = vld [vmem:[#allocation4 + $0x36] ss:$2 sm:$0xff]  ;;  %1414 = vst.msk [vmem:[#allocation4 + $0x50] sm:$0xff] %vm789_vm7, %v1388_v9 }
 0x650   : > { %1454 = vst.msk [vmem:[#allocation5 + $0x10] sm:$0xff] %vm789_vm7, %v1453_v43  ;;  %v1393_v57 = vadd.f32 %v2212_v0, %v1392_v55  ;;  %1529 = vmatpush.msrb.mxu0 %v1493_v14 }
 0x652   : > { %v1397_v29 = vsel %vm1396_vm15, %v2212_v0, %v1393_v57  ;;  %1530 = vmatpush.msrb.mxu0 %v1492_v15  ;;  %v1599_v0 = vld [vmem:[%s3160_s10] sm:$0xff] }
 0x653   : > { %v1402_v62 = vsel %vm1399_vm1, %v1401_v58, %v1397_v29  ;;  %v2232_v29 = vld [vmem:[%s3155_s5 + $0x10] sm:$0xff] }
 0x654   : > { %v1403_v1 = vmul.f32 %v1402_v62, %v1283_v59  ;;  %1531 = vmatpush.msrb.mxu0 %v1491_v16  ;;  %v2231_v59 = vld [vmem:[%s3155_s5 + $0x18] sm:$0xff]  ;;  %v2233_v62 = vld [vmem:[%s3155_s5 + $0x8] sm:$0xff] }
 0x656   : > { %1415 = vst.msk [vmem:[#allocation4 + $0x58] sm:$0xff] %vm789_vm7, %v1403_v1  ;;  %1532 = vmatpush.msrb.mxu0 %v1490_v26  ;;  %v2234_v1 = vld [vmem:[%s3155_s5] sm:$0xff] }
 0x657   : > { %v2177_v26 = vld [vmem:[%s3154_s4 + $0x1] ss:$0 sm:$0xff] }
 0x65d   : > { %v1480_v2 = vld [vmem:[#allocation4 + $0x50] ss:$2 sm:$0xff]  ;;  %v1473_v3 = vld [vmem:[#allocation4 + $0x4f] ss:$2 sm:$0xff] }
 0x65e   : > { %v1470_v5 = vld [vmem:[#allocation4 + $0x4e] ss:$2 sm:$0xff]  ;;  %1482 = vrot.lane.b32.xlu0 %v1480_v2, %s2304_s13  ;;  %1475 = vrot.lane.b32.xlu2 %v1473_v3, %s2303_s24  ;;  %s2046_s24 = sshll.u32 %s378_s15, 5  ;;  %s2249_s13 = sshra.s32 %s1980_s21, 4  ;;  %s2250_s13 = int_to_ptr.hbm [resolvable:$true] %s2249_s13 }
 0x65f   : > { %1471 = vst.msk [vmem:[#allocation5 + $0x18] sm:$0xff] %vm789_vm7, %v1470_v5  ;;  %s3093_s14 = scalar_lea.vmem [#allocation6], %s2046_s24  ;;  %s2251_s24 = scalar_lea.hbm %s2250_s13, 32 }
 0x660   : > { %s1977_s30 = sshll.u32 %s3093_s14, 4  ;;  %p2252_p11 = scmp.ne.s32.totalorder %s2250_s13, %s2251_s24  ;;  %s1978_s30 = int_to_ptr.vmem [resolvable:$true] %s1977_s30 }
 0x661   : > { %p2256_p0 = scmp.lt.s32.totalorder %s2250_s13, %s3161_s11  ;;  %p2257_p1 = scmp.lt.s32.totalorder %s2255_s25, %s2251_s24 }
 0x662   : > { %p2253_p12 = pnand %p2252_p11, %p2404_p5 }
 0x663   : > { %p2258_p2 = por %p2257_p1, %p2256_p0 }
 0x664   : > { %p2254_p13 = pneg %p2253_p12 }
 0x666   : > { %p2259_p3 = pnand %p2258_p2, %p2254_p13 }
 0x688   : > { %v1423_v17 = vpop.permute.xlu2 %1422 }
 0x689   : > { %1426 = vst.msk [vmem:[#allocation5] sm:$0xff] %vm1425_vm2, %v1423_v17 }
 0x698   : > { %v1449_v61 = vpop.permute.xlu2 %1448 }
 0x6a0   : > { %v1431_v18 = vpop.permute.xlu0 %1430 }
 0x6a1   : > { %1434 = vst.msk [vmem:[#allocation5] sm:$0xff] %vm1433_vm3, %v1431_v18 }
 0x6a8   : > { %v1486_v21 = vld [vmem:[#allocation5] sm:$0xff] }
 0x6a9   : > { %2095 = vmatmul.msk.f32.vlgmr.msrb.gmra.mxu0 %vm1504_vm4, %v1486_v21 }
 0x6b0   : > { %v1442_v22 = vpop.permute.xlu1 %1441 }
 0x6b1   : > { %1444 = vst.msk [vmem:[#allocation5 + $0x8] sm:$0xff] %vm1425_vm2, %v1442_v22  ;;  %v2178_v22 = vld [vmem:[%s3154_s4 + $0x2] ss:$0 sm:$0xff] }
 0x6b2   : > { %1451 = vst.msk [vmem:[#allocation5 + $0x8] sm:$0xff] %vm1433_vm3, %v1449_v61 }
 0x6b8   : > { %v1476_v23 = vpop.permute.xlu2 %1475 }
 0x6b9   : > { %v1487_v24 = vld [vmem:[#allocation5 + $0x8] sm:$0xff]  ;;  %1478 = vst.msk [vmem:[#allocation5 + $0x18] sm:$0xff] %vm1425_vm2, %v1476_v23 }
 0x6ba   : > { %2096 = vmatmul.msk.f32.gmra.mxu0 %vm1504_vm4, %v1487_v24 }
 0x6c1   : > { %v1466_v60 = vpop.permute.xlu1 %1465  ;;  %v1459_v27 = vpop.permute.xlu0 %1458 }
 0x6c2   : > { %1461 = vst.msk [vmem:[#allocation5 + $0x10] sm:$0xff] %vm1425_vm2, %v1459_v27 }
 0x6c3   : > { %1468 = vst.msk [vmem:[#allocation5 + $0x10] sm:$0xff] %vm1433_vm3, %v1466_v60 }
 0x6ca   : > { %v1488_v63 = vld [vmem:[#allocation5 + $0x10] sm:$0xff] }
 0x6cb   : > { %2097 = vmatmul.msk.f32.gmra.mxu0 %vm1504_vm4, %v1488_v63 }
 0x6d0   : > { %v1483_v28 = vpop.permute.xlu0 %1482 }
 0x6d1   : > { %1485 = vst.msk [vmem:[#allocation5 + $0x18] sm:$0xff] %vm1433_vm3, %v1483_v28 }
 0x6d8   : > { %v1489_v30 = vld [vmem:[#allocation5 + $0x18] sm:$0xff] }
 0x6d9   : > { %2098 = vmatmul.msk.f32.gmra.mxu0 %vm1504_vm4, %v1489_v30 }
 0x726   : > { %v1534_v32 = vpop.f32.mrf.mxu0 }
 0x727   : > { %v1535_v42 = vadd.f32 %v2176_v35, %v1534_v32 }
 0x737   : > { %v1537_v33 = vpop.f32.mrf.mxu0 }
 0x738   : > { %v1538_v39 = vadd.f32 %v2176_v35, %v1537_v33 }
 0x748   : > { %v1540_v34 = vpop.f32.mrf.mxu0 }
 0x749   : > { %v1541_v38 = vadd.f32 %v2176_v35, %v1540_v34 }
 0x756   : > { %v1543_v36 = vpop.f32.mrf.mxu0 }
 0x757   : > { %v1544_v37 = vadd.f32 %v2176_v35, %v1543_v36 }
 0x759   : > { %1564 = vmatpush.msra.mxu0 %v1544_v37 }
 0x75b   : > { %1565 = vmatpush.msra.mxu0 %v1541_v38 }
 0x75d   : > { %1566 = vmatpush.msra.mxu0 %v1538_v39 }
 0x75f   : > { %1567 = vmatpush.msra.mxu0 %v1535_v42 }
 0x760   : > { %2099 = vmatmul.msk.f32.vlgmr.msra.gmra.mxu0 %vm789_vm7, %v1548_v31 }
 0x761   : > { %1676 = vmatpush.msrb.mxu0 %v2686_v8 }
 0x7dd   : > { %v1569_v44 = vpop.f32.mrf.mxu0 }
 0x7de   : > { %2100 = vmatmul.msk.f32.vlgmr.msrb.gmra.mxu3 %vm789_vm7, %v1569_v44 }
 0x861   : > { %v1596_v48 = vpop.f32.mrf.mxu3 }
 0x862   : > { %v1603_v49 = vmul.f32 0.03125, %v1596_v48 }
 0x864   : > { %2101 = vmatpush.msk.msra.mxu2 %vm847_vm8, %v1603_v49 }
 0x865   : > { %2102 = vmatmul.msk.f32.vlgmr.msra.gmra.mxu2 %vm822_vm9, %v1599_v0 }
 0x866   : > { %1812 = vmatpush.msrb.mxu2 %v2686_v8 }
 0x86d   : > { %2103 = vmatmul.msk.f32.gmra.mxu2 %vm822_vm9, %v1600_v40 }
 0x875   : > { %2104 = vmatmul.msk.f32.gmra.mxu2 %vm822_vm9, %v1601_v41 }
 0x87d   : > { %2105 = vmatmul.msk.f32.gmra.mxu2 %vm822_vm9, %v1602_v50 }
 0x8e8   : > { %v1636_v51 = vpop.f32.mrf.mxu2 }
 0x8e9   : > { %2106 = vmatmul.msk.f32.vlgmr.msrb.gmra.mxu0 %vm388_vm0, %v1636_v51 }
 0x8f0   : > { %v1639_v8 = vpop.f32.mrf.mxu2 }
 0x8f1   : > { %2107 = vmatmul.msk.f32.gmra.mxu0 %vm388_vm0, %v1639_v8 }
 0x8f8   : > { %v1642_v52 = vpop.f32.mrf.mxu2 }
 0x8f9   : > { %2108 = vmatmul.msk.f32.gmra.mxu0 %vm388_vm0, %v1642_v52 }
 0x900   : > { %v1645_v45 = vpop.f32.mrf.mxu2 }
 0x901   : > { %2109 = vmatmul.msk.f32.gmra.mxu0 %vm388_vm0, %v1645_v45 }
 0x966   : > { %v1678_v46 = vpop.f32.mrf.mxu0 }
 0x967   : > { %v1690_v56 = vsub.f32 %v1535_v42, %v1678_v46 }
 0x969   : > { %v1694_v58 = vmul.f32 %v1690_v56, %v1690_v56 }
 0x96e   : > { %v1681_v47 = vpop.f32.mrf.mxu0 }
 0x96f   : > { %v1691_v9 = vsub.f32 %v1538_v39, %v1681_v47 }
 0x971   : > { %v1695_v57 = vmul.f32 %v1691_v9, %v1691_v9 }
 0x976   : > { %v1684_v53 = vpop.f32.mrf.mxu0 }
 0x977   : > { %v3027_v54 = vsub.f32 %v1541_v38, %v1684_v53 }
 0x979   : > { %v1696_v4 = vmul.f32 %v3027_v54, %v3027_v54 }
 0x97e   : > { %v1687_v25 = vpop.f32.mrf.mxu0 }
 0x97f   : > { %v3029_v43 = vsub.f32 %v1544_v37, %v1687_v25 }
 0x981   : > { %v1697_v55 = vmul.f32 %v3029_v43, %v3029_v43 }
 0x983   : > { %1710 = vmatpush.msrb.mxu1 %v1697_v55 }
 0x985   : > { %1711 = vmatpush.msrb.mxu1 %v1696_v4 }
 0x987   : > { %1712 = vmatpush.msrb.mxu1 %v1695_v57 }
 0x989   : > { %1713 = vmatpush.msrb.mxu1 %v1694_v58 }
 0x98a   : > { %2110 = vmatmul.msk.f32.vlgmr.msrb.gmra.mxu1 %vm789_vm7, %v1548_v31 }
 0x98b   : > { %1733 = vmatpush.msra.mxu1 %v2231_v59 }
 0x98d   : > { %1734 = vmatpush.msra.mxu1 %v2232_v29 }
 0x98f   : > { %1735 = vmatpush.msra.mxu1 %v2233_v62 }
 0x991   : > { %1736 = vmatpush.msra.mxu1 %v2234_v1 }
 0xa07   : > { %v1715_v2 = vpop.f32.mrf.mxu1 }
 0xa08   : > { %2111 = vmatmul.msk.f32.vlgmr.msra.gmra.mxu1 %vm789_vm7, %v1715_v2 }
 0xa85   : > { %v1738_v3 = vpop.f32.mrf.mxu1 }
 0xa86   : > { %v1741_v5 = vmul.f32 0.03125, %v1738_v3 }
 0xa88   : > { %v1742_v6 = vadd.f32 1e-05, %v1741_v5 }
 0xa8a   : > { %2213 = vrsqrt.f32 %v1742_v6  ;;  %vm1749_vm6 = vweird.f32 %v1742_v6 }
 0xa90   : > { %v2214_v20 = vpop.eup %2213 }
 0xa91   : > { %v1744_v11 = vmul.f32 %v2214_v20, %v1742_v6  ;;  %vm1750_vm5 = vweird.f32 %v2214_v20 }
 0xa92   : > { %vm1751_vm10 = vmor %vm1749_vm6, %vm1750_vm5 }
 0xa93   : > { %v1745_v19 = vmul.f32 %v2214_v20, %v1744_v11 }
 0xa95   : > { %v1746_v12 = vmul.f32 0.5, %v1745_v19 }
 0xa97   : > { %v1747_v13 = vsub.f32 1.5, %v1746_v12 }
 0xa99   : > { %v1748_v7 = vmul.f32 %v2214_v20, %v1747_v13 }
 0xa9b   : > { %v1752_v10 = vsel %vm1751_vm10, %v2214_v20, %v1748_v7 }
 0xa9c   : > { %2112 = vmatpush.msk.msrb.mxu1 %vm847_vm8, %v1752_v10 }
 0xa9d   : > { %2113 = vmatmul.msk.f32.vlgmr.msrb.gmra.mxu1 %vm822_vm9, %v1599_v0 }
 0xaa5   : > { %2114 = vmatmul.msk.f32.gmra.mxu1 %vm822_vm9, %v1600_v40 }
 0xaad   : > { %2115 = vmatmul.msk.f32.gmra.mxu1 %vm822_vm9, %v1601_v41 }
 0xab5   : > { %2116 = vmatmul.msk.f32.gmra.mxu1 %vm822_vm9, %v1602_v50 }
 0xb1a   : > { %v1773_v14 = vpop.f32.mrf.mxu1 }
 0xb1b   : > { %2117 = vmatmul.msk.f32.vlgmr.msrb.gmra.mxu2 %vm388_vm0, %v1773_v14 }
 0xb22   : > { %v1776_v15 = vpop.f32.mrf.mxu1 }
 0xb23   : > { %2118 = vmatmul.msk.f32.gmra.mxu2 %vm388_vm0, %v1776_v15 }
 0xb2a   : > { %v1779_v16 = vpop.f32.mrf.mxu1 }
 0xb2b   : > { %2119 = vmatmul.msk.f32.gmra.mxu2 %vm388_vm0, %v1779_v16 }
 0xb32   : > { %v1782_v17 = vpop.f32.mrf.mxu1 }
 0xb33   : > { %2120 = vmatmul.msk.f32.gmra.mxu2 %vm388_vm0, %v1782_v17 }
 0xb9e   : > { %v1814_v18 = vpop.f32.mrf.mxu2 }
 0xb9f   : > { %v1826_v21 = vmul.f32 %v1814_v18, %v1690_v56 }
 0xba1   : > { %v1831_v61 = vmul.f32 %v2177_v26, %v1826_v21 }
 0xba3   : > { %v3064_v23 = vadd.f32 %v2178_v22, %v1831_v61 }
 0xba5   : > { %v1840_v24 = vand.u32 2147483647, %v3064_v23  ;;  %vm1856_vm0 = vcmp.ge.f32.partialorder %v3064_v23, 0.0 }
 0xba6   : > { %v1817_v60 = vpop.f32.mrf.mxu2 }
 0xba7   : > { %v1844_v27 = vsub.f32 0.0, %v1840_v24  ;;  %v1827_v63 = vmul.f32 %v1817_v60, %v1691_v9 }
 0xba9   : > { %v1848_v28 = vmul.f32 1.442695, %v1844_v27  ;;  %v1832_v30 = vmul.f32 %v2177_v26, %v1827_v63 }
 0xbab   : > { %2215 = vpow2.f32 %v1848_v28  ;;  %v3067_v32 = vadd.f32 %v2178_v22, %v1832_v30 }
 0xbad   : > { %v1841_v33 = vand.u32 2147483647, %v3067_v32  ;;  %vm1857_vm8 = vcmp.ge.f32.partialorder %v3067_v32, 0.0 }
 0xbae   : > { %v1820_v34 = vpop.f32.mrf.mxu2 }
 0xbaf   : > { %v1845_v35 = vsub.f32 0.0, %v1841_v33  ;;  %v1828_v36 = vmul.f32 %v1820_v34, %v3027_v54 }
 0xbb1   : > { %v2216_v37 = vpop.eup %2215  ;;  %v1850_v38 = vmul.f32 1.442695, %v1845_v35  ;;  %v1833_v39 = vmul.f32 %v2177_v26, %v1828_v36 }
 0xbb2   : > { %v1860_v42 = vmul.f32 2.0, %v2216_v37  ;;  %v1868_v31 = vadd.f32 2.0, %v2216_v37 }
 0xbb3   : > { %2217 = vpow2.f32 %v1850_v38  ;;  %v3071_v44 = vadd.f32 %v2178_v22, %v1833_v39 }
 0xbb4   : > { %v1864_v48 = vadd.f32 1.0, %v1860_v42  ;;  %v1872_v49 = vmul.f32 %v2216_v37, %v1868_v31  ;;  %v1880_v0 = vmul.f32 %v2216_v37, %v1860_v42 }
 0xbb5   : > { %v1842_v40 = vand.u32 2147483647, %v3071_v44  ;;  %vm1858_vm13 = vcmp.ge.f32.partialorder %v3071_v44, 0.0 }
 0xbb6   : > { %v1884_v41 = vadd.f32 %v1880_v0, %v1864_v48  ;;  %v1888_v50 = vadd.f32 2.0, %v1872_v49  ;;  %v1823_v51 = vpop.f32.mrf.mxu2  ;;  %v1876_v13 = vsel %vm1856_vm0, %v1864_v48, %v1872_v49 }
 0xbb7   : > { %v1846_v8 = vsub.f32 0.0, %v1842_v40  ;;  %v1829_v52 = vmul.f32 %v1823_v51, %v3029_v43  ;;  %v1896_v21 = vmul.f32 %v1876_v13, %v3064_v23 }
 0xbb8   : > { %v1892_v45 = vsel %vm1856_vm0, %v1884_v41, %v1888_v50 }
 0xbb9   : > { %v2218_v46 = vpop.eup %2217  ;;  %2219 = vrcp.f32 %v1892_v45  ;;  %v1852_v25 = vmul.f32 1.442695, %v1846_v8  ;;  %v1834_v54 = vmul.f32 %v2177_v26, %v1829_v52  ;;  %v1911_v5 = vand.u32 2147483648, %v1892_v45 }
 0xbba   : > { %v1861_v47 = vmul.f32 2.0, %v2218_v46  ;;  %v1869_v53 = vadd.f32 2.0, %v2218_v46  ;;  %v1909_v19 = vand.u32 2147483647, %v1892_v45  ;;  %vm1905_vm11 = vweird.f32 %v1892_v45 }
 0xbbb   : > { %2221 = vpow2.f32 %v1852_v25  ;;  %v3078_v4 = vadd.f32 %v2178_v22, %v1834_v54  ;;  %v1912_v17 = vor.u32 1.1754944e-38, %v1911_v5 }
 0xbbc   : > { %v1865_v9 = vadd.f32 1.0, %v1861_v47  ;;  %v1873_v55 = vmul.f32 %v2218_v46, %v1869_v53  ;;  %v1881_v56 = vmul.f32 %v2218_v46, %v1861_v47  ;;  %vm1910_vm14 = vcmp.eq.f32.partialorder %v1909_v19, 8.507059e+37 }
 0xbbd   : > { %v1843_v43 = vand.u32 2147483647, %v3078_v4  ;;  %vm1859_vm4 = vcmp.ge.f32.partialorder %v3078_v4, 0.0 }
 0xbbe   : > { %v1885_v57 = vadd.f32 %v1881_v56, %v1865_v9  ;;  %v1889_v58 = vadd.f32 2.0, %v1873_v55  ;;  %v1877_v34 = vsel %vm1857_vm8, %v1865_v9, %v1873_v55 }
 0xbbf   : > { %v2220_v59 = vpop.eup %2219  ;;  %v1847_v3 = vsub.f32 0.0, %v1843_v43  ;;  %v1897_v49 = vmul.f32 %v1877_v34, %v3067_v32 }
 0xbc0   : > { %v1901_v29 = vmul.f32 %v2220_v59, %v1892_v45  ;;  %v1893_v62 = vsel %vm1857_vm8, %v1885_v57, %v1889_v58  ;;  %vm1906_vm9 = vweird.f32 %v2220_v59 }
 0xbc1   : > { %2223 = vrcp.f32 %v1893_v62  ;;  %v2222_v1 = vpop.eup %2221  ;;  %v1854_v12 = vmul.f32 1.442695, %v1847_v3  ;;  %vm1907_vm12 = vmor %vm1905_vm11, %vm1906_vm9  ;;  %v1926_v28 = vand.u32 2147483648, %v1893_v62  ;;  %v1924_v23 = vand.u32 2147483647, %v1893_v62 }
 0xbc2   : > { %v1902_v2 = vsub.f32 1.0, %v1901_v29  ;;  %v1862_v6 = vmul.f32 2.0, %v2222_v1  ;;  %v1870_v20 = vadd.f32 2.0, %v2222_v1  ;;  %vm1920_vm1 = vweird.f32 %v1893_v62 }
 0xbc3   : > { %2225 = vpow2.f32 %v1854_v12  ;;  %v1927_v38 = vor.u32 1.1754944e-38, %v1926_v28  ;;  %vm1925_vm3 = vcmp.eq.f32.partialorder %v1924_v23, 8.507059e+37 }
 0xbc4   : > { %v1903_v11 = vmul.f32 %v2220_v59, %v1902_v2  ;;  %v1866_v7 = vadd.f32 1.0, %v1862_v6  ;;  %v1874_v10 = vmul.f32 %v2222_v1, %v1870_v20  ;;  %v1882_v14 = vmul.f32 %v2222_v1, %v1862_v6 }
 0xbc6   : > { %v1904_v15 = vadd.f32 %v2220_v59, %v1903_v11  ;;  %v1886_v26 = vadd.f32 %v1882_v14, %v1866_v7  ;;  %v1890_v18 = vadd.f32 2.0, %v1874_v10  ;;  %v1878_v53 = vsel %vm1858_vm13, %v1866_v7, %v1874_v10 }
 0xbc7   : > { %v2224_v16 = vpop.eup %2223  ;;  %v1898_v9 = vmul.f32 %v1878_v53, %v3071_v44 }
 0xbc8   : > { %v1908_v22 = vsel %vm1907_vm12, %v2220_v59, %v1904_v15  ;;  %v1916_v61 = vmul.f32 %v2224_v16, %v1893_v62  ;;  %v1894_v60 = vsel %vm1858_vm13, %v1886_v26, %v1890_v18  ;;  %vm1921_vm15 = vweird.f32 %v2224_v16 }
 0xbc9   : > { %v1913_v24 = vsel %vm1910_vm14, %v1912_v17, %v1908_v22  ;;  %2227 = vrcp.f32 %v1894_v60  ;;  %v2226_v30 = vpop.eup %2225  ;;  %vm1922_vm2 = vmor %vm1920_vm1, %vm1921_vm15  ;;  %v1941_v45 = vand.u32 2147483648, %v1894_v60  ;;  %v1939_v32 = vand.u32 2147483647, %v1894_v60 }
 0xbca   : > { %v1914_v27 = vmul.f32 %v1913_v24, %v1896_v21  ;;  %v1917_v63 = vsub.f32 1.0, %v1916_v61  ;;  %v1863_v35 = vmul.f32 2.0, %v2226_v30  ;;  %v1871_v36 = vadd.f32 2.0, %v2226_v30 }
 0xbcb   : > { %vm1935_vm6 = vweird.f32 %v1894_v60  ;;  %v1942_v54 = vor.u32 1.1754944e-38, %v1941_v45  ;;  %vm1940_vm0 = vcmp.eq.f32.partialorder %v1939_v32, 8.507059e+37 }
 0xbcc   : > { %1960 = vst.msk [vmem:[%s3093_s14] sm:$0xff] %vm789_vm7, %v1914_v27  ;;  %v1918_v33 = vmul.f32 %v2224_v16, %v1917_v63  ;;  %v1867_v39 = vadd.f32 1.0, %v1863_v35  ;;  %v1875_v42 = vmul.f32 %v2226_v30, %v1871_v36  ;;  %v1883_v31 = vmul.f32 %v2226_v30, %v1863_v35 }
 0xbce   : > { %v1919_v37 = vadd.f32 %v2224_v16, %v1918_v33  ;;  %v1887_v51 = vadd.f32 %v1883_v31, %v1867_v39  ;;  %v1891_v8 = vadd.f32 2.0, %v1875_v42  ;;  %v1879_v44 = vsel %vm1859_vm4, %v1867_v39, %v1875_v42 }
 0xbcf   : > { %v2228_v48 = vpop.eup %2227  ;;  %v1899_v5 = vmul.f32 %v1879_v44, %v3078_v4 }
 0xbd0   : > { %v1923_v0 = vsel %vm1922_vm2, %v2224_v16, %v1919_v37  ;;  %v1931_v41 = vmul.f32 %v2228_v48, %v1894_v60  ;;  %v1895_v46 = vsel %vm1859_vm4, %v1887_v51, %v1891_v8  ;;  %vm1936_vm5 = vweird.f32 %v2228_v48 }
 0xbd1   : > { %v1928_v40 = vsel %vm1925_vm3, %v1927_v38, %v1923_v0  ;;  %2229 = vrcp.f32 %v1895_v46  ;;  %vm1937_vm10 = vmor %vm1935_vm6, %vm1936_vm5  ;;  %v1956_v29 = vand.u32 2147483648, %v1895_v46  ;;  %v1954_v1 = vand.u32 2147483647, %v1895_v46 }
 0xbd2   : > { %v1929_v50 = vmul.f32 %v1928_v40, %v1897_v49  ;;  %v1932_v52 = vsub.f32 1.0, %v1931_v41  ;;  %vm1950_vm9 = vweird.f32 %v1895_v46 }
 0xbd3   : > { %v1957_v3 = vor.u32 1.1754944e-38, %v1956_v29  ;;  %vm1955_vm12 = vcmp.eq.f32.partialorder %v1954_v1, 8.507059e+37 }
 0xbd4   : > { %1961 = vst.msk [vmem:[%s3093_s14 + $0x8] sm:$0xff] %vm789_vm7, %v1929_v50  ;;  %v1933_v47 = vmul.f32 %v2228_v48, %v1932_v52 }
 0xbd6   : > { %v1934_v25 = vadd.f32 %v2228_v48, %v1933_v47 }
 0xbd7   : > { %v2230_v57 = vpop.eup %2229 }
 0xbd8   : > { %v1938_v55 = vsel %vm1937_vm10, %v2228_v48, %v1934_v25  ;;  %v1946_v59 = vmul.f32 %v2230_v57, %v1895_v46  ;;  %vm1951_vm8 = vweird.f32 %v2230_v57 }
 0xbd9   : > { %v1943_v56 = vsel %vm1940_vm0, %v1942_v54, %v1938_v55  ;;  %vm1952_vm11 = vmor %vm1950_vm9, %vm1951_vm8 }
 0xbda   : > { %v1944_v58 = vmul.f32 %v1943_v56, %v1898_v9  ;;  %v1947_v43 = vsub.f32 1.0, %v1946_v59 }
 0xbdc   : > { %1962 = vst.msk [vmem:[%s3093_s14 + $0x10] sm:$0xff] %vm789_vm7, %v1944_v58  ;;  %v1948_v62 = vmul.f32 %v2230_v57, %v1947_v43 }
 0xbde   : > { %v1949_v2 = vadd.f32 %v2230_v57, %v1948_v62 }
 0xbe0   : > { %v1953_v6 = vsel %vm1952_vm11, %v2230_v57, %v1949_v2 }
 0xbe1   : > { %v1958_v20 = vsel %vm1955_vm12, %v1957_v3, %v1953_v6 }
 0xbe2   : > { %v1959_v11 = vmul.f32 %v1958_v20, %v1899_v5 }
 0xbe4   : > { %1963 = vst.msk [vmem:[%s3093_s14 + $0x18] sm:$0xff] %vm789_vm7, %v1959_v11 }
 0xbe5   : > { %2262 = shalt.err (!%p2259_p3)
}
 0xbe6   : > { %s2305_s15 = smov 128   ;;  %s3167_s14 = smov 8  }
 0xbe7   : > { %2127 = dma.vmem_to_hbm [thread:$0]  (%p2404_p5), %s1978_s30, 512, %s1980_s21, %s1965_s12, %s2305_s15, %s2305_s15, %s3167_s14  }
 0xbe8 PF: > { %p2133_p4 = scmp.ge.s32.totalorder %s2297_s20, 2  ;;  %s1994_s16 = sand.u32 1, %s2285_s17  }
 0xbe9   : > { %s1995_s0 = scalar_lea.sflag [#allocation7], %s1994_s16 }
 0xbea   : > { %p2130_p7 = pnand %p2133_p4, %p2408_p6 }
 0xbec   : > { %p2131_p8 = pneg %p2130_p7 }
 0xbee   : > { %2280 = dma.done.wait (%p2131_p8), %s1995_s0, 512  }
 0xbef   : > { %2282 = vsyncadd (%p2131_p8), %s1995_s0, 4294966784  ;;  %p21_p9 = scmp.ge.s32.totalorder %s2391_s23, 4   ;;  %s3168_s17 = smov %s2289_s18 }
 0xbf0   : > { %s3169_s18 = smov %s2293_s19  ;;  %s3170_s19 = smov %s2402_s26 }
 0xbf1   : > { %s3171_s20 = smov %s2391_s23  ;;  %23 = sbr.rel (!%p21_p9) target bundleno = 5 (0x5), region = 151 }
 0xbf6   :  { %2001 = vsyncpa [#allocation7], 1 }
 0xbf7   :  { %2003 = vsyncpa [#allocation7 + $0x1], 1 }

</bundles_post_ra>
